<compile_context>
chip_gen: v5e
topology: v5e:2x2
jax: 0.10.0
libtpu: 0.0.40
codegen_flags: <defaults>
</compile_context>

<pallas_src>
import functools

import jax
import jax.numpy as jnp
from jax.experimental import pallas as pl
from jax.experimental.pallas import tpu as pltpu


def _layernorm(x, gamma, beta, eps=1e-5):
    mean = jnp.mean(x, axis=-1, keepdims=True)
    var = jnp.mean((x - mean) ** 2, axis=-1, keepdims=True)
    return (x - mean) * jax.lax.rsqrt(var + eps) * gamma + beta


# -----------------------------------------------------------------------------
# Pallas kernel: one batch element per grid step.
# -----------------------------------------------------------------------------
def transformer_block_kernel(
    # activations (per grid step n)
    vhm_ref,      # (H*S, D) bf16  value, head-major flattened
    khm_ref,      # (H*S, D) bf16  key,   head-major flattened
    qhm_ref,      # (H*S, D) bf16  query, head-major flattened
    qres_ref,     # (S, E)   f32   query, token-major (residual path)
    mask_ref,     # (1, S)   f32   key mask (0 => masked)
    # weights (resident: constant index_maps)
    wv_ref,       # (D, D) bf16 (in, out)
    wk_ref,       # (D, D) bf16
    wq_ref,       # (D, D) bf16, 1/sqrt(E) folded in
    wfc_ref,      # (E, E) bf16 (in, out)
    bfc_ref,      # (1, E) f32
    g1_ref,       # (1, E) f32
    b1_ref,       # (1, E) f32
    w1_ref,       # (E, F) bf16 (in, out)
    bias1_ref,    # (1, F) f32
    w2_ref,       # (F, E) bf16 (in, out)
    bias2_ref,    # (1, E) f32
    g2_ref,       # (1, E) f32
    b2_ref,       # (1, E) f32
    out_ref,      # (S, E) f32
    *,
    heads: int,
    head_dim: int,
    seq: int,
    embed_size: int,
    tile_f: int,
):
    H, D, S, E = heads, head_dim, seq, embed_size

    # --- Q/K/V projections: true (D, D) per-head weights on head-major tokens
    v = jnp.dot(vhm_ref[...], wv_ref[...], preferred_element_type=jnp.float32)  # (H*S, D)
    k = jnp.dot(khm_ref[...], wk_ref[...], preferred_element_type=jnp.float32)
    q = jnp.dot(qhm_ref[...], wq_ref[...], preferred_element_type=jnp.float32)

    # Key mask, hoisted once per batch element. True => masked out.
    # (A fully-masked row degrades to a uniform distribution, same as the
    # reference's -1e20 fill behaviour.)
    mask_bad = jnp.broadcast_to(mask_ref[...] == 0.0, (S, S))

    nt_dims = (((1,), (1,)), ((), ()))   # q @ k^T without materializing k^T

    # --- attention + fc_out, accumulated per head into a lane-dense (S, E) buf
    attn_proj = jnp.zeros((S, E), jnp.float32)
    for h in range(H):              # tiny static head loop (batch is on the grid)
        r0 = h * S                  # sublane (row) slices: no lane shuffling
        qh = q[r0:r0 + S]           # (S, D)
        kh = k[r0:r0 + S]
        vh = v[r0:r0 + S]

        energy = jax.lax.dot_general(qh, kh, nt_dims,
                                     preferred_element_type=jnp.float32)  # (S, S)
        energy = jnp.where(mask_bad, jnp.float32(-1e20), energy)
        energy = energy - jnp.max(energy, axis=-1, keepdims=True)          # stable
        e = jnp.exp(energy)
        p = e * pl.reciprocal(jnp.sum(e, axis=-1, keepdims=True), approx=True)
        oh = jnp.dot(p, vh, preferred_element_type=jnp.float32)            # (S, D)

        # fc_out contribution of this head: (S, D) @ (D, E) row-block of Wfc^T.
        # Output is full-lane-width (S, E): no masked stores, no concat scratch.
        c0 = h * D
        attn_proj = attn_proj + jnp.dot(
            oh.astype(jnp.bfloat16), wfc_ref[c0:c0 + D, :],
            preferred_element_type=jnp.float32)

    attn_out = attn_proj + bfc_ref[...]

    # --- residual + norm1 (dropout p=0 in eval -> identity) -------------------
    x1 = _layernorm(attn_out + qres_ref[...], g1_ref[...], b1_ref[...])

    # --- feed forward (ReLU MLP), tiled over F so (S, F) never materializes ---
    x1_bf = x1.astype(jnp.bfloat16)
    F = w1_ref.shape[1]
    ffn = jnp.zeros((S, E), jnp.float32)
    for f0 in range(0, F, tile_f):
        hblk = jnp.dot(x1_bf, w1_ref[:, f0:f0 + tile_f],
                       preferred_element_type=jnp.float32) + bias1_ref[:, f0:f0 + tile_f]
        hblk = jnp.maximum(hblk, 0.0)
        ffn = ffn + jnp.dot(hblk.astype(jnp.bfloat16), w2_ref[f0:f0 + tile_f, :],
                            preferred_element_type=jnp.float32)
    ffn = ffn + bias2_ref[...]

    # --- residual + norm2 ------------------------------------------------------
    out_ref[...] = _layernorm(ffn + x1, g2_ref[...], b2_ref[...])


# -----------------------------------------------------------------------------
# Wrapper: host-side weight/activation prep + pallas_call with a batch grid.
# -----------------------------------------------------------------------------
def transformer_block(value, key, query, mask, params, *, heads, embed_size):
    """value/key/query: (N, S, E) f32; mask: (N, S) (0 => masked). Returns (N, S, E)."""
    N, S, E = query.shape
    D = E // heads
    F = params["w1"].shape[0]
    HS = heads * S
    tile_f = min(F, 1024)
    assert F % tile_f == 0

    inv_scale = 1.0 / (float(embed_size) ** 0.5)   # module divides by sqrt(embed_size)

    def head_major(x):  # (N, S, E) -> (N, H*S, D) bf16
        return (x.reshape(N, S, heads, D)
                 .transpose(0, 2, 1, 3)
                 .reshape(N, HS, D)
                 .astype(jnp.bfloat16))

    kern = functools.partial(
        transformer_block_kernel,
        heads=heads, head_dim=D, seq=S, embed_size=E, tile_f=tile_f)

    def act3(shape):   # per-batch block of a 3-D activation
        return pl.BlockSpec((None,) + shape, lambda n: (n, 0, 0))

    def const2(shape):  # resident 2-D weight / bias
        return pl.BlockSpec(shape, lambda n: (0, 0))

    out = pl.pallas_call(
        kern,
        grid=(N,),
        out_shape=jax.ShapeDtypeStruct((N, S, E), jnp.float32),
        in_specs=[
            act3((HS, D)),                                   # value head-major
            act3((HS, D)),                                   # key   head-major
            act3((HS, D)),                                   # query head-major
            act3((S, E)),                                    # query residual (f32)
            act3((1, S)),                                    # mask (N,1,S)
            const2((D, D)), const2((D, D)), const2((D, D)),  # wv, wk, wq
            const2((E, E)), const2((1, E)),                  # wfc, bfc
            const2((1, E)), const2((1, E)),                  # g1, b1
            const2((E, F)), const2((1, F)),                  # w1, bias1
            const2((F, E)), const2((1, E)),                  # w2, bias2
            const2((1, E)), const2((1, E)),                  # g2, b2
        ],
        out_specs=pl.BlockSpec((None, S, E), lambda n: (n, 0, 0)),
        compiler_params=pltpu.CompilerParams(
            dimension_semantics=("parallel",),          # 2 TCs on v7x split the batch
            vmem_limit_bytes=32 * 1024 * 1024),         # sweep once tiles grow
    )(
        head_major(value), head_major(key), head_major(query),
        query.astype(jnp.float32),
        mask.astype(jnp.float32)[:, None, :],
        params["wv"].T.astype(jnp.bfloat16),
        params["wk"].T.astype(jnp.bfloat16),
        (params["wq"] * inv_scale).T.astype(jnp.bfloat16),   # scale folded into wq
        params["wfc"].T.astype(jnp.bfloat16), params["bfc"],
        params["g1"], params["b1"],
        params["w1"].T.astype(jnp.bfloat16), params["bias1"],
        params["w2"].T.astype(jnp.bfloat16), params["bias2"],
        params["g2"], params["b2"],
    )
    return out


# -----------------------------------------------------------------------------
# Pure-JAX reference (mirrors the PyTorch module exactly, in f32).
# -----------------------------------------------------------------------------
def _ref_layernorm(x, g, b, eps=1e-5):
    m = jnp.mean(x, axis=-1, keepdims=True)
    v = jnp.mean((x - m) ** 2, axis=-1, keepdims=True)
    return (x - m) / jnp.sqrt(v + eps) * g + b


def _ref_block(value, key, query, mask, p, heads, head_dim, embed_size):
    N, Sq, E = query.shape
    Sk = key.shape[1]
    vh = value.reshape(N, Sk, heads, head_dim)
    kh = key.reshape(N, Sk, heads, head_dim)
    qh = query.reshape(N, Sq, heads, head_dim)
    v = jnp.einsum("nkhd,ed->nkhe", vh, p["wv"])
    k = jnp.einsum("nkhd,ed->nkhe", kh, p["wk"])
    q = jnp.einsum("nqhd,ed->nqhe", qh, p["wq"])
    energy = jnp.einsum("nqhd,nkhd->nhqk", q, k)
    energy = jnp.where(mask[:, None, None, :] == 0, -1e20, energy)
    attn = jax.nn.softmax(energy / (embed_size ** 0.5), axis=3)
    out = jnp.einsum("nhqk,nkhd->nqhd", attn, v).reshape(N, Sq, E)
    attn_out = out @ p["wfc"].T + p["bfc"][0]
    x1 = _ref_layernorm(attn_out + query, p["g1"][0], p["b1"][0])
    h1 = jnp.maximum(x1 @ p["w1"].T + p["bias1"][0], 0.0)
    ffn = h1 @ p["w2"].T + p["bias2"][0]
    return _ref_layernorm(ffn + x1, p["g2"][0], p["b2"][0])


# -----------------------------------------------------------------------------
# Deterministic parameters (PyTorch (out_features, in_features) layout).
# -----------------------------------------------------------------------------
def init_params(key, *, embed_size, heads, forward_expansion):
    D = embed_size // heads
    F = forward_expansion * embed_size
    ks = jax.random.split(key, 12)
    return {
        "wv": 0.1 * jax.random.normal(ks[0], (D, D), jnp.float32),
        "wk": 0.1 * jax.random.normal(ks[1], (D, D), jnp.float32),
        "wq": 0.1 * jax.random.normal(ks[2], (D, D), jnp.float32),
        "wfc": 0.1 * jax.random.normal(ks[3], (embed_size, embed_size), jnp.float32),
        "bfc": 0.01 * jax.random.normal(ks[4], (1, embed_size), jnp.float32),
        "g1": 1.0 + 0.1 * jax.random.normal(ks[5], (1, embed_size), jnp.float32),
        "b1": 0.05 * jax.random.normal(ks[6], (1, embed_size), jnp.float32),
        "w1": 0.1 * jax.random.normal(ks[7], (F, embed_size), jnp.float32),
        "bias1": 0.01 * jax.random.normal(ks[8], (1, F), jnp.float32),
        "w2": 0.05 * jax.random.normal(ks[9], (embed_size, F), jnp.float32),
        "bias2": jnp.zeros((1, embed_size), jnp.float32),
        "g2": 1.0 + 0.1 * jax.random.normal(ks[10], (1, embed_size), jnp.float32),
        "b2": 0.05 * jax.random.normal(ks[11], (1, embed_size), jnp.float32),
    }


if __name__ == "__main__":
    # Small demo config; E = 128 so every token-major lane dimension is dense.
    embed_size = 128
    heads = 4
    forward_expansion = 4
    N, S = 2, 16

    root = jax.random.PRNGKey(0)
    kp, kv, kk, kq, km = jax.random.split(root, 5)

    params = init_params(kp, embed_size=embed_size, heads=heads,
                         forward_expansion=forward_expansion)

    value = jax.random.normal(kv, (N, S, embed_size), jnp.float32)
    key_in = jax.random.normal(kk, (N, S, embed_size), jnp.float32)
    query = jax.random.normal(kq, (N, S, embed_size), jnp.float32)
    # Key-padding mask (N, S): 1 = keep, 0 = masked (== PyTorch mask (N,1,1,S)).
    mask = (jax.random.uniform(km, (N, S)) > 0.1).astype(jnp.float32)
    mask = mask.at[:, 0].set(1.0)   # never mask an entire row

    @jax.jit
    def run(value, key_in, query, mask, params):
        return transformer_block(value, key_in, query, mask, params,
                                 heads=heads, embed_size=embed_size)

    out = run(value, key_in, query, mask, params)
    out = jax.block_until_ready(out)

    ref = _ref_block(value, key_in, query, mask, params,
                     heads, embed_size // heads, embed_size)
    assert out.shape == (N, S, embed_size)
    max_err = float(jnp.max(jnp.abs(out - ref)))
    # bf16 matmul inputs (f32 accumulation) + approx reciprocal -> small drift vs f32 ref.
    assert max_err < 5e-2, f"mismatch vs reference: max abs err {max_err}"

    print("KERNEL_OK")
</pallas_src>

<mosaic_0001>
module attributes {stable_mosaic.version = 11 : i64} {
  func.func @transformer_block_kernel(%arg0: i32, %arg1: memref<1x64x32xbf16, #tpu.memory_space<vmem>>, %arg2: memref<1x64x32xbf16, #tpu.memory_space<vmem>>, %arg3: memref<1x64x32xbf16, #tpu.memory_space<vmem>>, %arg4: memref<1x16x128xf32, #tpu.memory_space<vmem>>, %arg5: memref<1x1x16xf32, #tpu.memory_space<vmem>>, %arg6: memref<32x32xbf16, #tpu.memory_space<vmem>>, %arg7: memref<32x32xbf16, #tpu.memory_space<vmem>>, %arg8: memref<32x32xbf16, #tpu.memory_space<vmem>>, %arg9: memref<128x128xbf16, #tpu.memory_space<vmem>>, %arg10: memref<1x128xf32, #tpu.memory_space<vmem>>, %arg11: memref<1x128xf32, #tpu.memory_space<vmem>>, %arg12: memref<1x128xf32, #tpu.memory_space<vmem>>, %arg13: memref<128x512xbf16, #tpu.memory_space<vmem>>, %arg14: memref<1x512xf32, #tpu.memory_space<vmem>>, %arg15: memref<512x128xbf16, #tpu.memory_space<vmem>>, %arg16: memref<1x128xf32, #tpu.memory_space<vmem>>, %arg17: memref<1x128xf32, #tpu.memory_space<vmem>>, %arg18: memref<1x128xf32, #tpu.memory_space<vmem>>, %arg19: memref<1x16x128xf32, #tpu.memory_space<vmem>>) attributes {dimension_semantics = [#tpu.dimension_semantics<parallel>], iteration_bounds = array<i64: 2>, scalar_prefetch = 0 : i64, scratch_operands = 0 : i64, tpu.core_type = #tpu.core_type<tc>, window_params = [{transform_indices = @transform_0, window_bounds = array<i64: 1, 64, 32>}, {transform_indices = @transform_1, window_bounds = array<i64: 1, 64, 32>}, {transform_indices = @transform_2, window_bounds = array<i64: 1, 64, 32>}, {transform_indices = @transform_3, window_bounds = array<i64: 1, 16, 128>}, {transform_indices = @transform_4, window_bounds = array<i64: 1, 1, 16>}, {pipeline_mode = #tpu.pipeline_mode<synchronous>, transform_indices = @transform_5, window_bounds = array<i64: 32, 32>}, {pipeline_mode = #tpu.pipeline_mode<synchronous>, transform_indices = @transform_6, window_bounds = array<i64: 32, 32>}, {pipeline_mode = #tpu.pipeline_mode<synchronous>, transform_indices = @transform_7, window_bounds = array<i64: 32, 32>}, {pipeline_mode = #tpu.pipeline_mode<synchronous>, transform_indices = @transform_8, window_bounds = array<i64: 128, 128>}, {pipeline_mode = #tpu.pipeline_mode<synchronous>, transform_indices = @transform_9, window_bounds = array<i64: 1, 128>}, {pipeline_mode = #tpu.pipeline_mode<synchronous>, transform_indices = @transform_10, window_bounds = array<i64: 1, 128>}, {pipeline_mode = #tpu.pipeline_mode<synchronous>, transform_indices = @transform_11, window_bounds = array<i64: 1, 128>}, {pipeline_mode = #tpu.pipeline_mode<synchronous>, transform_indices = @transform_12, window_bounds = array<i64: 128, 512>}, {pipeline_mode = #tpu.pipeline_mode<synchronous>, transform_indices = @transform_13, window_bounds = array<i64: 1, 512>}, {pipeline_mode = #tpu.pipeline_mode<synchronous>, transform_indices = @transform_14, window_bounds = array<i64: 512, 128>}, {pipeline_mode = #tpu.pipeline_mode<synchronous>, transform_indices = @transform_15, window_bounds = array<i64: 1, 128>}, {pipeline_mode = #tpu.pipeline_mode<synchronous>, transform_indices = @transform_16, window_bounds = array<i64: 1, 128>}, {pipeline_mode = #tpu.pipeline_mode<synchronous>, transform_indices = @transform_17, window_bounds = array<i64: 1, 128>}, {transform_indices = @transform_18, window_bounds = array<i64: 1, 16, 128>}]} {
    %c0 = arith.constant 0 : index
    %c0_0 = arith.constant 0 : index
    %c0_1 = arith.constant 0 : index
    %0 = vector.load %arg1[%c0, %c0_0, %c0_1] : memref<1x64x32xbf16, #tpu.memory_space<vmem>>, vector<1x64x32xbf16>
    %1 = vector.shape_cast %0 : vector<1x64x32xbf16> to vector<64x32xbf16>
    %c0_2 = arith.constant 0 : index
    %c0_3 = arith.constant 0 : index
    %2 = vector.load %arg6[%c0_2, %c0_3] : memref<32x32xbf16, #tpu.memory_space<vmem>>, vector<32x32xbf16>
    %cst = arith.constant dense<0.000000e+00> : vector<64x32xf32>
    %3 = tpu.matmul %1, %2, %cst {dimension_numbers = #tpu.dot_dimension_numbers<[1], [0], [0], [1], [0, 0, 1, 1], [], []>} : vector<64x32xbf16>, vector<32x32xbf16>, vector<64x32xf32> -> vector<64x32xf32>
    %c0_4 = arith.constant 0 : index
    %c0_5 = arith.constant 0 : index
    %c0_6 = arith.constant 0 : index
    %4 = vector.load %arg2[%c0_4, %c0_5, %c0_6] : memref<1x64x32xbf16, #tpu.memory_space<vmem>>, vector<1x64x32xbf16>
    %5 = vector.shape_cast %4 : vector<1x64x32xbf16> to vector<64x32xbf16>
    %c0_7 = arith.constant 0 : index
    %c0_8 = arith.constant 0 : index
    %6 = vector.load %arg7[%c0_7, %c0_8] : memref<32x32xbf16, #tpu.memory_space<vmem>>, vector<32x32xbf16>
    %cst_9 = arith.constant dense<0.000000e+00> : vector<64x32xf32>
    %7 = tpu.matmul %5, %6, %cst_9 {dimension_numbers = #tpu.dot_dimension_numbers<[1], [0], [0], [1], [0, 0, 1, 1], [], []>} : vector<64x32xbf16>, vector<32x32xbf16>, vector<64x32xf32> -> vector<64x32xf32>
    %c0_10 = arith.constant 0 : index
    %c0_11 = arith.constant 0 : index
    %c0_12 = arith.constant 0 : index
    %8 = vector.load %arg3[%c0_10, %c0_11, %c0_12] : memref<1x64x32xbf16, #tpu.memory_space<vmem>>, vector<1x64x32xbf16>
    %9 = vector.shape_cast %8 : vector<1x64x32xbf16> to vector<64x32xbf16>
    %c0_13 = arith.constant 0 : index
    %c0_14 = arith.constant 0 : index
    %10 = vector.load %arg8[%c0_13, %c0_14] : memref<32x32xbf16, #tpu.memory_space<vmem>>, vector<32x32xbf16>
    %cst_15 = arith.constant dense<0.000000e+00> : vector<64x32xf32>
    %11 = tpu.matmul %9, %10, %cst_15 {dimension_numbers = #tpu.dot_dimension_numbers<[1], [0], [0], [1], [0, 0, 1, 1], [], []>} : vector<64x32xbf16>, vector<32x32xbf16>, vector<64x32xf32> -> vector<64x32xf32>
    %c0_16 = arith.constant 0 : index
    %c0_17 = arith.constant 0 : index
    %c0_18 = arith.constant 0 : index
    %12 = vector.load %arg5[%c0_16, %c0_17, %c0_18] : memref<1x1x16xf32, #tpu.memory_space<vmem>>, vector<1x1x16xf32>
    %13 = vector.shape_cast %12 : vector<1x1x16xf32> to vector<1x16xf32>
    %cst_19 = arith.constant 0.000000e+00 : f32
    %14 = vector.broadcast %cst_19 : f32 to vector<1x16xf32>
    %15 = arith.cmpf oeq, %13, %14 : vector<1x16xf32>
    %16 = vector.shape_cast %15 : vector<1x16xi1> to vector<1x16xi1>
    %17 = vector.broadcast %16 : vector<1x16xi1> to vector<16x16xi1>
    %cst_20 = arith.constant 0.000000e+00 : f32
    %18 = vector.broadcast %cst_20 : f32 to vector<16x128xf32>
    %19 = vector.extract_strided_slice %11 {offsets = [0, 0], sizes = [16, 32], strides = [1, 1]} : vector<64x32xf32> to vector<16x32xf32>
    %20 = vector.extract_strided_slice %7 {offsets = [0, 0], sizes = [16, 32], strides = [1, 1]} : vector<64x32xf32> to vector<16x32xf32>
    %21 = vector.extract_strided_slice %3 {offsets = [0, 0], sizes = [16, 32], strides = [1, 1]} : vector<64x32xf32> to vector<16x32xf32>
    %cst_21 = arith.constant dense<0.000000e+00> : vector<16x16xf32>
    %22 = tpu.matmul %19, %20, %cst_21 {dimension_numbers = #tpu.dot_dimension_numbers<[1], [1], [0], [0], [0, 0, 1, 0], [], []>} : vector<16x32xf32>, vector<16x32xf32>, vector<16x16xf32> -> vector<16x16xf32>
    %cst_22 = arith.constant -1.000000e+20 : f32
    %23 = vector.broadcast %cst_22 : f32 to vector<16x16xf32>
    %24 = arith.select %17, %23, %22 : vector<16x16xi1>, vector<16x16xf32>
    %cst_23 = arith.constant dense<0xFF800000> : vector<16xf32>
    %25 = vector.multi_reduction <maximumf>, %24, %cst_23 [1] : vector<16x16xf32> to vector<16xf32>
    %26 = vector.shape_cast %25 : vector<16xf32> to vector<16x1xf32>
    %27 = vector.broadcast %26 : vector<16x1xf32> to vector<16x16xf32>
    %28 = arith.subf %24, %27 : vector<16x16xf32>
    %29 = math.exp %28 : vector<16x16xf32>
    %cst_24 = arith.constant dense<0.000000e+00> : vector<16xf32>
    %30 = vector.multi_reduction <add>, %29, %cst_24 [1] : vector<16x16xf32> to vector<16xf32>
    %31 = vector.shape_cast %30 : vector<16xf32> to vector<16x1xf32>
    %32 = tpu.reciprocal %31 {approx = true} : vector<16x1xf32> -> vector<16x1xf32>
    %33 = vector.broadcast %32 : vector<16x1xf32> to vector<16x16xf32>
    %34 = arith.mulf %29, %33 : vector<16x16xf32>
    %cst_25 = arith.constant dense<0.000000e+00> : vector<16x32xf32>
    %35 = tpu.matmul %34, %21, %cst_25 {dimension_numbers = #tpu.dot_dimension_numbers<[1], [0], [0], [1], [0, 0, 1, 1], [], []>} : vector<16x16xf32>, vector<16x32xf32>, vector<16x32xf32> -> vector<16x32xf32>
    %36 = arith.truncf %35 : vector<16x32xf32> to vector<16x32xbf16>
    %c0_26 = arith.constant 0 : index
    %c0_27 = arith.constant 0 : index
    %37 = vector.load %arg9[%c0_26, %c0_27] : memref<128x128xbf16, #tpu.memory_space<vmem>>, vector<32x128xbf16>
    %cst_28 = arith.constant dense<0.000000e+00> : vector<16x128xf32>
    %38 = tpu.matmul %36, %37, %cst_28 {dimension_numbers = #tpu.dot_dimension_numbers<[1], [0], [0], [1], [0, 0, 1, 1], [], []>} : vector<16x32xbf16>, vector<32x128xbf16>, vector<16x128xf32> -> vector<16x128xf32>
    %39 = arith.addf %18, %38 : vector<16x128xf32>
    %40 = vector.extract_strided_slice %11 {offsets = [16, 0], sizes = [16, 32], strides = [1, 1]} : vector<64x32xf32> to vector<16x32xf32>
    %41 = vector.extract_strided_slice %7 {offsets = [16, 0], sizes = [16, 32], strides = [1, 1]} : vector<64x32xf32> to vector<16x32xf32>
    %42 = vector.extract_strided_slice %3 {offsets = [16, 0], sizes = [16, 32], strides = [1, 1]} : vector<64x32xf32> to vector<16x32xf32>
    %cst_29 = arith.constant dense<0.000000e+00> : vector<16x16xf32>
    %43 = tpu.matmul %40, %41, %cst_29 {dimension_numbers = #tpu.dot_dimension_numbers<[1], [1], [0], [0], [0, 0, 1, 0], [], []>} : vector<16x32xf32>, vector<16x32xf32>, vector<16x16xf32> -> vector<16x16xf32>
    %cst_30 = arith.constant -1.000000e+20 : f32
    %44 = vector.broadcast %cst_30 : f32 to vector<16x16xf32>
    %45 = arith.select %17, %44, %43 : vector<16x16xi1>, vector<16x16xf32>
    %cst_31 = arith.constant dense<0xFF800000> : vector<16xf32>
    %46 = vector.multi_reduction <maximumf>, %45, %cst_31 [1] : vector<16x16xf32> to vector<16xf32>
    %47 = vector.shape_cast %46 : vector<16xf32> to vector<16x1xf32>
    %48 = vector.broadcast %47 : vector<16x1xf32> to vector<16x16xf32>
    %49 = arith.subf %45, %48 : vector<16x16xf32>
    %50 = math.exp %49 : vector<16x16xf32>
    %cst_32 = arith.constant dense<0.000000e+00> : vector<16xf32>
    %51 = vector.multi_reduction <add>, %50, %cst_32 [1] : vector<16x16xf32> to vector<16xf32>
    %52 = vector.shape_cast %51 : vector<16xf32> to vector<16x1xf32>
    %53 = tpu.reciprocal %52 {approx = true} : vector<16x1xf32> -> vector<16x1xf32>
    %54 = vector.broadcast %53 : vector<16x1xf32> to vector<16x16xf32>
    %55 = arith.mulf %50, %54 : vector<16x16xf32>
    %cst_33 = arith.constant dense<0.000000e+00> : vector<16x32xf32>
    %56 = tpu.matmul %55, %42, %cst_33 {dimension_numbers = #tpu.dot_dimension_numbers<[1], [0], [0], [1], [0, 0, 1, 1], [], []>} : vector<16x16xf32>, vector<16x32xf32>, vector<16x32xf32> -> vector<16x32xf32>
    %57 = arith.truncf %56 : vector<16x32xf32> to vector<16x32xbf16>
    %c32 = arith.constant 32 : index
    %c0_34 = arith.constant 0 : index
    %58 = vector.load %arg9[%c32, %c0_34] : memref<128x128xbf16, #tpu.memory_space<vmem>>, vector<32x128xbf16>
    %cst_35 = arith.constant dense<0.000000e+00> : vector<16x128xf32>
    %59 = tpu.matmul %57, %58, %cst_35 {dimension_numbers = #tpu.dot_dimension_numbers<[1], [0], [0], [1], [0, 0, 1, 1], [], []>} : vector<16x32xbf16>, vector<32x128xbf16>, vector<16x128xf32> -> vector<16x128xf32>
    %60 = arith.addf %39, %59 : vector<16x128xf32>
    %61 = vector.extract_strided_slice %11 {offsets = [32, 0], sizes = [16, 32], strides = [1, 1]} : vector<64x32xf32> to vector<16x32xf32>
    %62 = vector.extract_strided_slice %7 {offsets = [32, 0], sizes = [16, 32], strides = [1, 1]} : vector<64x32xf32> to vector<16x32xf32>
    %63 = vector.extract_strided_slice %3 {offsets = [32, 0], sizes = [16, 32], strides = [1, 1]} : vector<64x32xf32> to vector<16x32xf32>
    %cst_36 = arith.constant dense<0.000000e+00> : vector<16x16xf32>
    %64 = tpu.matmul %61, %62, %cst_36 {dimension_numbers = #tpu.dot_dimension_numbers<[1], [1], [0], [0], [0, 0, 1, 0], [], []>} : vector<16x32xf32>, vector<16x32xf32>, vector<16x16xf32> -> vector<16x16xf32>
    %cst_37 = arith.constant -1.000000e+20 : f32
    %65 = vector.broadcast %cst_37 : f32 to vector<16x16xf32>
    %66 = arith.select %17, %65, %64 : vector<16x16xi1>, vector<16x16xf32>
    %cst_38 = arith.constant dense<0xFF800000> : vector<16xf32>
    %67 = vector.multi_reduction <maximumf>, %66, %cst_38 [1] : vector<16x16xf32> to vector<16xf32>
    %68 = vector.shape_cast %67 : vector<16xf32> to vector<16x1xf32>
    %69 = vector.broadcast %68 : vector<16x1xf32> to vector<16x16xf32>
    %70 = arith.subf %66, %69 : vector<16x16xf32>
    %71 = math.exp %70 : vector<16x16xf32>
    %cst_39 = arith.constant dense<0.000000e+00> : vector<16xf32>
    %72 = vector.multi_reduction <add>, %71, %cst_39 [1] : vector<16x16xf32> to vector<16xf32>
    %73 = vector.shape_cast %72 : vector<16xf32> to vector<16x1xf32>
    %74 = tpu.reciprocal %73 {approx = true} : vector<16x1xf32> -> vector<16x1xf32>
    %75 = vector.broadcast %74 : vector<16x1xf32> to vector<16x16xf32>
    %76 = arith.mulf %71, %75 : vector<16x16xf32>
    %cst_40 = arith.constant dense<0.000000e+00> : vector<16x32xf32>
    %77 = tpu.matmul %76, %63, %cst_40 {dimension_numbers = #tpu.dot_dimension_numbers<[1], [0], [0], [1], [0, 0, 1, 1], [], []>} : vector<16x16xf32>, vector<16x32xf32>, vector<16x32xf32> -> vector<16x32xf32>
    %78 = arith.truncf %77 : vector<16x32xf32> to vector<16x32xbf16>
    %c64 = arith.constant 64 : index
    %c0_41 = arith.constant 0 : index
    %79 = vector.load %arg9[%c64, %c0_41] : memref<128x128xbf16, #tpu.memory_space<vmem>>, vector<32x128xbf16>
    %cst_42 = arith.constant dense<0.000000e+00> : vector<16x128xf32>
    %80 = tpu.matmul %78, %79, %cst_42 {dimension_numbers = #tpu.dot_dimension_numbers<[1], [0], [0], [1], [0, 0, 1, 1], [], []>} : vector<16x32xbf16>, vector<32x128xbf16>, vector<16x128xf32> -> vector<16x128xf32>
    %81 = arith.addf %60, %80 : vector<16x128xf32>
    %82 = vector.extract_strided_slice %11 {offsets = [48, 0], sizes = [16, 32], strides = [1, 1]} : vector<64x32xf32> to vector<16x32xf32>
    %83 = vector.extract_strided_slice %7 {offsets = [48, 0], sizes = [16, 32], strides = [1, 1]} : vector<64x32xf32> to vector<16x32xf32>
    %84 = vector.extract_strided_slice %3 {offsets = [48, 0], sizes = [16, 32], strides = [1, 1]} : vector<64x32xf32> to vector<16x32xf32>
    %cst_43 = arith.constant dense<0.000000e+00> : vector<16x16xf32>
    %85 = tpu.matmul %82, %83, %cst_43 {dimension_numbers = #tpu.dot_dimension_numbers<[1], [1], [0], [0], [0, 0, 1, 0], [], []>} : vector<16x32xf32>, vector<16x32xf32>, vector<16x16xf32> -> vector<16x16xf32>
    %cst_44 = arith.constant -1.000000e+20 : f32
    %86 = vector.broadcast %cst_44 : f32 to vector<16x16xf32>
    %87 = arith.select %17, %86, %85 : vector<16x16xi1>, vector<16x16xf32>
    %cst_45 = arith.constant dense<0xFF800000> : vector<16xf32>
    %88 = vector.multi_reduction <maximumf>, %87, %cst_45 [1] : vector<16x16xf32> to vector<16xf32>
    %89 = vector.shape_cast %88 : vector<16xf32> to vector<16x1xf32>
    %90 = vector.broadcast %89 : vector<16x1xf32> to vector<16x16xf32>
    %91 = arith.subf %87, %90 : vector<16x16xf32>
    %92 = math.exp %91 : vector<16x16xf32>
    %cst_46 = arith.constant dense<0.000000e+00> : vector<16xf32>
    %93 = vector.multi_reduction <add>, %92, %cst_46 [1] : vector<16x16xf32> to vector<16xf32>
    %94 = vector.shape_cast %93 : vector<16xf32> to vector<16x1xf32>
    %95 = tpu.reciprocal %94 {approx = true} : vector<16x1xf32> -> vector<16x1xf32>
    %96 = vector.broadcast %95 : vector<16x1xf32> to vector<16x16xf32>
    %97 = arith.mulf %92, %96 : vector<16x16xf32>
    %cst_47 = arith.constant dense<0.000000e+00> : vector<16x32xf32>
    %98 = tpu.matmul %97, %84, %cst_47 {dimension_numbers = #tpu.dot_dimension_numbers<[1], [0], [0], [1], [0, 0, 1, 1], [], []>} : vector<16x16xf32>, vector<16x32xf32>, vector<16x32xf32> -> vector<16x32xf32>
    %99 = arith.truncf %98 : vector<16x32xf32> to vector<16x32xbf16>
    %c96 = arith.constant 96 : index
    %c0_48 = arith.constant 0 : index
    %100 = vector.load %arg9[%c96, %c0_48] : memref<128x128xbf16, #tpu.memory_space<vmem>>, vector<32x128xbf16>
    %cst_49 = arith.constant dense<0.000000e+00> : vector<16x128xf32>
    %101 = tpu.matmul %99, %100, %cst_49 {dimension_numbers = #tpu.dot_dimension_numbers<[1], [0], [0], [1], [0, 0, 1, 1], [], []>} : vector<16x32xbf16>, vector<32x128xbf16>, vector<16x128xf32> -> vector<16x128xf32>
    %102 = arith.addf %81, %101 : vector<16x128xf32>
    %c0_50 = arith.constant 0 : index
    %c0_51 = arith.constant 0 : index
    %103 = vector.load %arg10[%c0_50, %c0_51] : memref<1x128xf32, #tpu.memory_space<vmem>>, vector<1x128xf32>
    %104 = vector.broadcast %103 : vector<1x128xf32> to vector<16x128xf32>
    %105 = arith.addf %102, %104 : vector<16x128xf32>
    %c0_52 = arith.constant 0 : index
    %c0_53 = arith.constant 0 : index
    %c0_54 = arith.constant 0 : index
    %106 = vector.load %arg4[%c0_52, %c0_53, %c0_54] : memref<1x16x128xf32, #tpu.memory_space<vmem>>, vector<1x16x128xf32>
    %107 = vector.shape_cast %106 : vector<1x16x128xf32> to vector<16x128xf32>
    %108 = arith.addf %105, %107 : vector<16x128xf32>
    %c0_55 = arith.constant 0 : index
    %c0_56 = arith.constant 0 : index
    %109 = vector.load %arg11[%c0_55, %c0_56] : memref<1x128xf32, #tpu.memory_space<vmem>>, vector<1x128xf32>
    %c0_57 = arith.constant 0 : index
    %c0_58 = arith.constant 0 : index
    %110 = vector.load %arg12[%c0_57, %c0_58] : memref<1x128xf32, #tpu.memory_space<vmem>>, vector<1x128xf32>
    %cst_59 = arith.constant dense<0.000000e+00> : vector<16xf32>
    %111 = vector.multi_reduction <add>, %108, %cst_59 [1] : vector<16x128xf32> to vector<16xf32>
    %112 = vector.shape_cast %111 : vector<16xf32> to vector<16x1xf32>
    %cst_60 = arith.constant 1.280000e+02 : f32
    %113 = vector.broadcast %cst_60 : f32 to vector<16x1xf32>
    %114 = arith.divf %112, %113 : vector<16x1xf32>
    %115 = vector.broadcast %114 : vector<16x1xf32> to vector<16x128xf32>
    %116 = arith.subf %108, %115 : vector<16x128xf32>
    %117 = arith.mulf %116, %116 : vector<16x128xf32>
    %cst_61 = arith.constant dense<0.000000e+00> : vector<16xf32>
    %118 = vector.multi_reduction <add>, %117, %cst_61 [1] : vector<16x128xf32> to vector<16xf32>
    %119 = vector.shape_cast %118 : vector<16xf32> to vector<16x1xf32>
    %cst_62 = arith.constant 1.280000e+02 : f32
    %120 = vector.broadcast %cst_62 : f32 to vector<16x1xf32>
    %121 = arith.divf %119, %120 : vector<16x1xf32>
    %122 = vector.broadcast %114 : vector<16x1xf32> to vector<16x128xf32>
    %123 = arith.subf %108, %122 : vector<16x128xf32>
    %cst_63 = arith.constant 9.99999974E-6 : f32
    %124 = vector.broadcast %cst_63 : f32 to vector<16x1xf32>
    %125 = arith.addf %121, %124 : vector<16x1xf32>
    %126 = math.rsqrt %125 : vector<16x1xf32>
    %127 = vector.broadcast %126 : vector<16x1xf32> to vector<16x128xf32>
    %128 = arith.mulf %123, %127 : vector<16x128xf32>
    %129 = vector.broadcast %109 : vector<1x128xf32> to vector<16x128xf32>
    %130 = arith.mulf %128, %129 : vector<16x128xf32>
    %131 = vector.broadcast %110 : vector<1x128xf32> to vector<16x128xf32>
    %132 = arith.addf %130, %131 : vector<16x128xf32>
    %133 = arith.truncf %132 : vector<16x128xf32> to vector<16x128xbf16>
    %cst_64 = arith.constant 0.000000e+00 : f32
    %134 = vector.broadcast %cst_64 : f32 to vector<16x128xf32>
    %c0_65 = arith.constant 0 : index
    %c0_66 = arith.constant 0 : index
    %135 = vector.load %arg13[%c0_65, %c0_66] : memref<128x512xbf16, #tpu.memory_space<vmem>>, vector<128x512xbf16>
    %cst_67 = arith.constant dense<0.000000e+00> : vector<16x512xf32>
    %136 = tpu.matmul %133, %135, %cst_67 {dimension_numbers = #tpu.dot_dimension_numbers<[1], [0], [0], [1], [0, 0, 1, 1], [], []>} : vector<16x128xbf16>, vector<128x512xbf16>, vector<16x512xf32> -> vector<16x512xf32>
    %c0_68 = arith.constant 0 : index
    %c0_69 = arith.constant 0 : index
    %137 = vector.load %arg14[%c0_68, %c0_69] : memref<1x512xf32, #tpu.memory_space<vmem>>, vector<1x512xf32>
    %138 = vector.broadcast %137 : vector<1x512xf32> to vector<16x512xf32>
    %139 = arith.addf %136, %138 : vector<16x512xf32>
    %cst_70 = arith.constant 0.000000e+00 : f32
    %140 = vector.broadcast %cst_70 : f32 to vector<16x512xf32>
    %141 = arith.maximumf %139, %140 : vector<16x512xf32>
    %142 = arith.truncf %141 : vector<16x512xf32> to vector<16x512xbf16>
    %c0_71 = arith.constant 0 : index
    %c0_72 = arith.constant 0 : index
    %143 = vector.load %arg15[%c0_71, %c0_72] : memref<512x128xbf16, #tpu.memory_space<vmem>>, vector<512x128xbf16>
    %cst_73 = arith.constant dense<0.000000e+00> : vector<16x128xf32>
    %144 = tpu.matmul %142, %143, %cst_73 {dimension_numbers = #tpu.dot_dimension_numbers<[1], [0], [0], [1], [0, 0, 1, 1], [], []>} : vector<16x512xbf16>, vector<512x128xbf16>, vector<16x128xf32> -> vector<16x128xf32>
    %145 = arith.addf %134, %144 : vector<16x128xf32>
    %c0_74 = arith.constant 0 : index
    %c0_75 = arith.constant 0 : index
    %146 = vector.load %arg16[%c0_74, %c0_75] : memref<1x128xf32, #tpu.memory_space<vmem>>, vector<1x128xf32>
    %147 = vector.broadcast %146 : vector<1x128xf32> to vector<16x128xf32>
    %148 = arith.addf %145, %147 : vector<16x128xf32>
    %149 = arith.addf %148, %132 : vector<16x128xf32>
    %c0_76 = arith.constant 0 : index
    %c0_77 = arith.constant 0 : index
    %150 = vector.load %arg17[%c0_76, %c0_77] : memref<1x128xf32, #tpu.memory_space<vmem>>, vector<1x128xf32>
    %c0_78 = arith.constant 0 : index
    %c0_79 = arith.constant 0 : index
    %151 = vector.load %arg18[%c0_78, %c0_79] : memref<1x128xf32, #tpu.memory_space<vmem>>, vector<1x128xf32>
    %cst_80 = arith.constant dense<0.000000e+00> : vector<16xf32>
    %152 = vector.multi_reduction <add>, %149, %cst_80 [1] : vector<16x128xf32> to vector<16xf32>
    %153 = vector.shape_cast %152 : vector<16xf32> to vector<16x1xf32>
    %cst_81 = arith.constant 1.280000e+02 : f32
    %154 = vector.broadcast %cst_81 : f32 to vector<16x1xf32>
    %155 = arith.divf %153, %154 : vector<16x1xf32>
    %156 = vector.broadcast %155 : vector<16x1xf32> to vector<16x128xf32>
    %157 = arith.subf %149, %156 : vector<16x128xf32>
    %158 = arith.mulf %157, %157 : vector<16x128xf32>
    %cst_82 = arith.constant dense<0.000000e+00> : vector<16xf32>
    %159 = vector.multi_reduction <add>, %158, %cst_82 [1] : vector<16x128xf32> to vector<16xf32>
    %160 = vector.shape_cast %159 : vector<16xf32> to vector<16x1xf32>
    %cst_83 = arith.constant 1.280000e+02 : f32
    %161 = vector.broadcast %cst_83 : f32 to vector<16x1xf32>
    %162 = arith.divf %160, %161 : vector<16x1xf32>
    %163 = vector.broadcast %155 : vector<16x1xf32> to vector<16x128xf32>
    %164 = arith.subf %149, %163 : vector<16x128xf32>
    %cst_84 = arith.constant 9.99999974E-6 : f32
    %165 = vector.broadcast %cst_84 : f32 to vector<16x1xf32>
    %166 = arith.addf %162, %165 : vector<16x1xf32>
    %167 = math.rsqrt %166 : vector<16x1xf32>
    %168 = vector.broadcast %167 : vector<16x1xf32> to vector<16x128xf32>
    %169 = arith.mulf %164, %168 : vector<16x128xf32>
    %170 = vector.broadcast %150 : vector<1x128xf32> to vector<16x128xf32>
    %171 = arith.mulf %169, %170 : vector<16x128xf32>
    %172 = vector.broadcast %151 : vector<1x128xf32> to vector<16x128xf32>
    %173 = arith.addf %171, %172 : vector<16x128xf32>
    %c0_85 = arith.constant 0 : index
    %c0_86 = arith.constant 0 : index
    %c0_87 = arith.constant 0 : index
    %174 = vector.load %arg19[%c0_85, %c0_86, %c0_87] : memref<1x16x128xf32, #tpu.memory_space<vmem>>, vector<1x16x128xf32>
    %175 = vector.shape_cast %174 : vector<1x16x128xf32> to vector<16x128xf32>
    %176 = vector.shape_cast %173 : vector<16x128xf32> to vector<1x16x128xf32>
    tpu.vector_store %arg19[%c0_85, %c0_86, %c0_87], %176 {strides = array<i32>} : memref<1x16x128xf32, #tpu.memory_space<vmem>>, vector<1x16x128xf32>,
    return
  }
  func.func @transform_0(%arg0: i32) -> (i32, i32, i32) {
    %c0_i32 = arith.constant 0 : i32
    %c0_i32_0 = arith.constant 0 : i32
    %c0_i32_1 = arith.constant 0 : i32
    return %arg0, %c0_i32, %c0_i32_0 : i32, i32, i32
  }
  func.func @transform_1(%arg0: i32) -> (i32, i32, i32) {
    %c0_i32 = arith.constant 0 : i32
    %c0_i32_0 = arith.constant 0 : i32
    %c0_i32_1 = arith.constant 0 : i32
    return %arg0, %c0_i32, %c0_i32_0 : i32, i32, i32
  }
  func.func @transform_2(%arg0: i32) -> (i32, i32, i32) {
    %c0_i32 = arith.constant 0 : i32
    %c0_i32_0 = arith.constant 0 : i32
    %c0_i32_1 = arith.constant 0 : i32
    return %arg0, %c0_i32, %c0_i32_0 : i32, i32, i32
  }
  func.func @transform_3(%arg0: i32) -> (i32, i32, i32) {
    %c0_i32 = arith.constant 0 : i32
    %c0_i32_0 = arith.constant 0 : i32
    %c0_i32_1 = arith.constant 0 : i32
    return %arg0, %c0_i32, %c0_i32_0 : i32, i32, i32
  }
  func.func @transform_4(%arg0: i32) -> (i32, i32, i32) {
    %c0_i32 = arith.constant 0 : i32
    %c0_i32_0 = arith.constant 0 : i32
    %c0_i32_1 = arith.constant 0 : i32
    return %arg0, %c0_i32, %c0_i32_0 : i32, i32, i32
  }
  func.func @transform_5(%arg0: i32) -> (i32, i32) {
    %c0_i32 = arith.constant 0 : i32
    %c0_i32_0 = arith.constant 0 : i32
    %c0_i32_1 = arith.constant 0 : i32
    return %c0_i32, %c0_i32_0 : i32, i32
  }
  func.func @transform_6(%arg0: i32) -> (i32, i32) {
    %c0_i32 = arith.constant 0 : i32
    %c0_i32_0 = arith.constant 0 : i32
    %c0_i32_1 = arith.constant 0 : i32
    return %c0_i32, %c0_i32_0 : i32, i32
  }
  func.func @transform_7(%arg0: i32) -> (i32, i32) {
    %c0_i32 = arith.constant 0 : i32
    %c0_i32_0 = arith.constant 0 : i32
    %c0_i32_1 = arith.constant 0 : i32
    return %c0_i32, %c0_i32_0 : i32, i32
  }
  func.func @transform_8(%arg0: i32) -> (i32, i32) {
    %c0_i32 = arith.constant 0 : i32
    %c0_i32_0 = arith.constant 0 : i32
    %c0_i32_1 = arith.constant 0 : i32
    return %c0_i32, %c0_i32_0 : i32, i32
  }
  func.func @transform_9(%arg0: i32) -> (i32, i32) {
    %c0_i32 = arith.constant 0 : i32
    %c0_i32_0 = arith.constant 0 : i32
    %c0_i32_1 = arith.constant 0 : i32
    return %c0_i32, %c0_i32_0 : i32, i32
  }
  func.func @transform_10(%arg0: i32) -> (i32, i32) {
    %c0_i32 = arith.constant 0 : i32
    %c0_i32_0 = arith.constant 0 : i32
    %c0_i32_1 = arith.constant 0 : i32
    return %c0_i32, %c0_i32_0 : i32, i32
  }
  func.func @transform_11(%arg0: i32) -> (i32, i32) {
    %c0_i32 = arith.constant 0 : i32
    %c0_i32_0 = arith.constant 0 : i32
    %c0_i32_1 = arith.constant 0 : i32
    return %c0_i32, %c0_i32_0 : i32, i32
  }
  func.func @transform_12(%arg0: i32) -> (i32, i32) {
    %c0_i32 = arith.constant 0 : i32
    %c0_i32_0 = arith.constant 0 : i32
    %c0_i32_1 = arith.constant 0 : i32
    return %c0_i32, %c0_i32_0 : i32, i32
  }
  func.func @transform_13(%arg0: i32) -> (i32, i32) {
    %c0_i32 = arith.constant 0 : i32
    %c0_i32_0 = arith.constant 0 : i32
    %c0_i32_1 = arith.constant 0 : i32
    return %c0_i32, %c0_i32_0 : i32, i32
  }
  func.func @transform_14(%arg0: i32) -> (i32, i32) {
    %c0_i32 = arith.constant 0 : i32
    %c0_i32_0 = arith.constant 0 : i32
    %c0_i32_1 = arith.constant 0 : i32
    return %c0_i32, %c0_i32_0 : i32, i32
  }
  func.func @transform_15(%arg0: i32) -> (i32, i32) {
    %c0_i32 = arith.constant 0 : i32
    %c0_i32_0 = arith.constant 0 : i32
    %c0_i32_1 = arith.constant 0 : i32
    return %c0_i32, %c0_i32_0 : i32, i32
  }
  func.func @transform_16(%arg0: i32) -> (i32, i32) {
    %c0_i32 = arith.constant 0 : i32
    %c0_i32_0 = arith.constant 0 : i32
    %c0_i32_1 = arith.constant 0 : i32
    return %c0_i32, %c0_i32_0 : i32, i32
  }
  func.func @transform_17(%arg0: i32) -> (i32, i32) {
    %c0_i32 = arith.constant 0 : i32
    %c0_i32_0 = arith.constant 0 : i32
    %c0_i32_1 = arith.constant 0 : i32
    return %c0_i32, %c0_i32_0 : i32, i32
  }
  func.func @transform_18(%arg0: i32) -> (i32, i32, i32) {
    %c0_i32 = arith.constant 0 : i32
    %c0_i32_0 = arith.constant 0 : i32
    %c0_i32_1 = arith.constant 0 : i32
    return %arg0, %c0_i32, %c0_i32_0 : i32, i32, i32
  }
}

</mosaic_0001>

<bundles_post_ra>
// kernel: run.1
= control target key start
LH: loop header
LB: loop body
LE: loop exit
PB: predicated region body
PF: predicated region fallthrough
CT: control target
= control target key end

     0   :  { %s3590_s0 = inlined_call_operand.vmem [shape: bf16[2,64,32], index: 0, kind: input, shape index: {}]   ;;  %s3591_s1 = inlined_call_operand.vmem [shape: bf16[2,64,32], index: 1, kind: input, shape index: {}]   ;;  %s3592_s2 = inlined_call_operand.vmem [shape: bf16[2,64,32], index: 2, kind: input, shape index: {}]   ;;  %s3593_s3 = inlined_call_operand.vmem [shape: f32[2,16,128], index: 3, kind: input, shape index: {}]   ;;  %s3594_s4 = inlined_call_operand.vmem [shape: f32[2,1,16], index: 4, kind: input, shape index: {}]   ;;  %s3595_s5 = inlined_call_operand.vmem [shape: bf16[32,32], index: 5, kind: input, shape index: {}]   ;;  %s3596_s6 = inlined_call_operand.vmem [shape: bf16[32,32], index: 6, kind: input, shape index: {}]   ;;  %s3597_s7 = inlined_call_operand.vmem [shape: bf16[32,32], index: 7, kind: input, shape index: {}]   ;;  %s3598_s8 = inlined_call_operand.vmem [shape: bf16[128,128], index: 8, kind: input, shape index: {}]   ;;  %s3599_s9 = inlined_call_operand.vmem [shape: f32[1,128], index: 9, kind: input, shape index: {}]   ;;  %s3600_s10 = inlined_call_operand.vmem [shape: f32[1,128], index: 10, kind: input, shape index: {}]   ;;  %s3601_s11 = inlined_call_operand.vmem [shape: f32[1,128], index: 11, kind: input, shape index: {}]   ;;  %s3602_s12 = inlined_call_operand.vmem [shape: bf16[128,512], index: 12, kind: input, shape index: {}]   ;;  %s3603_s13 = inlined_call_operand.vmem [shape: f32[1,512], index: 13, kind: input, shape index: {}]   ;;  %s3604_s14 = inlined_call_operand.vmem [shape: bf16[512,128], index: 14, kind: input, shape index: {}]   ;;  %s3605_s15 = inlined_call_operand.vmem [shape: f32[1,128], index: 15, kind: input, shape index: {}]   ;;  %s3606_s16 = inlined_call_operand.vmem [shape: f32[1,128], index: 16, kind: input, shape index: {}]   ;;  %s3607_s17 = inlined_call_operand.vmem [shape: f32[1,128], index: 17, kind: input, shape index: {}]   ;;  %s3608_s18 = inlined_call_operand.hbm [shape: f32[2,16,128], index: 18, kind: output, shape index: {}]  }
   0x1   :  { %3617 = sst [smem:[#allocation12_spill]] %s3590_s0 }
   0x2   :  { %3618 = sst [smem:[#allocation13_spill]] %s3591_s1 }
   0x3   :  { %3619 = sst [smem:[#allocation14_spill]] %s3592_s2 }
   0x4   :  { %3620 = sst [smem:[#allocation15_spill]] %s3596_s6 }
   0x5   :  { %3621 = sst [smem:[#allocation16_spill]] %s3597_s7 }
   0x6   :  { %23 = vsyncpa [#allocation3], 0 }
   0x7   :  { %25 = vsyncpa [#allocation3 + $0x1], 0  ;;  %s3005_s27 = smov 0   ;;  %s3007_s28 = smov 0  }
   0x8   :  { %s3009_s29 = smov 0   ;;  %s3011_s30 = smov 0  }
   0x9 LB: > { %3622 = sst [smem:[#allocation5_spill]] %s2892_s27  ;;  %s3026_s0 = sadd.s32 4294967295, %s2904_s30   ;;  %s2904_s30 = sphi %s3011_s30, %s3642_s30   ;;  %s2900_s29 = sphi %s3009_s29, %s3644_s29   ;;  %s2896_s28 = sphi %s3007_s28, %s3646_s28   ;;  %s2892_s27 = sphi %s3005_s27, %s3645_s27  }
   0xa   : > { %3623 = sst [smem:[#allocation6_spill]] %s2900_s29  ;;  %s2238_s19 = sadd.s32 4294967294, %s2904_s30  }
   0xb   : > { %3624 = sst [smem:[#allocation7_spill]] %s2904_s30  ;;  %s3030_s1 = sadd.s32 1, %s2904_s30  }
   0xc   : > { %3625 = sst [smem:[#allocation8_spill]] %s3030_s1  ;;  %s441_s20 = sadd.s32 1, %s2900_s29 }
   0xd   : > { %s438_s21 = ssub.s32 %s2904_s30, %s3030_s1  ;;  %p451_p0 = scmp.ne.s32.totalorder %s2900_s29, %s2896_s28 }
   0xe   : > { %p439_p1 = scmp.eq.s32.totalorder %s438_s21, 0  ;;  %p452_p2 = scmp.eq.s32.totalorder %s3026_s0, 1 }
   0xf   : > { %p457_p3 = scmp.ne.s32.totalorder %s2896_s28, %s2892_s27  ;;  %p458_p4 = scmp.eq.s32.totalorder %s2238_s19, 1 }
  0x10   : > { %s3041_s22 = scalar_select %p439_p1, %s2900_s29, %s441_s20  }
  0x11   : > { %p3043_p5 = por %p452_p2, %p451_p0  ;;  %p3047_p6 = por %p458_p4, %p457_p3 }
  0x12   : > { %3626 = sst [smem:[#allocation9_spill]] %s3041_s22  ;;  %p2241_p7 = scmp.ge.s32.totalorder %s2904_s30, 1 }
  0x13   : > { %s3627_s2 = scalar_select %p3043_p5, 1, 0 }
  0x14   : > { %s3629_s23 = scalar_select %p3047_p6, 1, 0 }
  0x15   : > { %3628 = sst [smem:[#allocation10_spill]] %s3627_s2  ;;  %p553_p8 = scmp.lt.s32.totalorder %s2904_s30, 3 }
  0x16   : > { %3630 = sst [smem:[#allocation11_spill]] %s3629_s23 }
  0x17   : > { %p554_p9 = pnand %p2241_p7, %p553_p8 }
  0x18   : > { %s3631_s6 = sld [smem:[#allocation15_spill]] (!%p554_p9)  ;;  %p625_p10 = scmp.lt.s32.totalorder (!%p554_p9), %s3026_s0, 1 }
  0x19   : > { %557 = sbr.rel (%p554_p9) target bundleno = 2225 (0x8b1), region = 92  ;;  %s3632_s7 = sld [smem:[#allocation16_spill]] (!%p554_p9) }
  0x1a   : > { %s3633_s27 = sld [smem:[#allocation13_spill]] (!%p554_p9) }
  0x1b   : > { %s3634_s2 = sld [smem:[#allocation14_spill]] (!%p554_p9) }
  0x1c   : > { %s3635_s21 = sld [smem:[#allocation12_spill]] (!%p554_p9) }
  0x1e   : > { %v2671_v0 = vld [vmem:[%s3631_s6 + $0x8] sm:$0xff]  ;;  %v2670_v2 = vld [vmem:[%s3631_s6] sm:$0xff]  ;;  %s3067_s1 = scalar_select %p625_p10, %s3026_s0, 1  ;;  %vm693_vm0 = vcmask 261120   ;;  %v2906_v14 = vmov 0   ;;  %vm947_vm3 = vcmask 130048  }
  0x1f   : > { %v2677_v1 = vld [vmem:[%s3632_s7 + $0x8] sm:$0xff]  ;;  %797 = vmatpush.bf16.msra.mxu1 %v2671_v0  ;;  %v2676_v3 = vld [vmem:[%s3632_s7] sm:$0xff] }
  0x20   : > { %882 = vmatpush.bf16.msra.mxu2 %v2677_v1  ;;  %s2656_s24 = sshll.u32 %s3067_s1, 5  ;;  %v2665_v10 = vld [vmem:[%s3595_s5 + $0x8] sm:$0xff]  ;;  %v2664_v11 = vld [vmem:[%s3595_s5] sm:$0xff]  ;;  %s647_s7 = scalar_lea.vmem %s3594_s4, %s3067_s1 }
  0x21   : > { %s3073_s26 = scalar_lea.vmem %s3633_s27, %s2656_s24  ;;  %s3078_s20 = scalar_lea.vmem %s3634_s2, %s2656_s24  ;;  %712 = vmatpush.bf16.msra.mxu0 %v2665_v10  ;;  %v905_v13 = vld [vmem:[%s647_s7] sm:$0x1]  ;;  %v2679_v50 = vld [vmem:[%s3598_s8 + $0x8] sm:$0xff] }
  0x22   : > { %v2666_v4 = vld [vmem:[%s3073_s26] sm:$0xff]  ;;  %s3097_s25 = scalar_lea.vmem %s3635_s21, %s2656_s24  ;;  %vm906_vm1 = vcmp.eq.f32.partialorder %v905_v13, 0.0  ;;  %v2667_v24 = vld [vmem:[%s3073_s26 + $0x8] sm:$0xff]  ;;  %v2668_v26 = vld [vmem:[%s3073_s26 + $0x10] sm:$0xff]  ;;  %s2659_s24 = sshll.u32 %s3067_s1, 4 }
  0x23   : > { %798 = vmatpush.bf16.msra.mxu1 %v2670_v2  ;;  %v2672_v5 = vld [vmem:[%s3078_s20] sm:$0xff]  ;;  %v907_v15 = vsel %vm906_vm1, 1, %v2906_v14  ;;  %v2673_v25 = vld [vmem:[%s3078_s20 + $0x8] sm:$0xff]  ;;  %v2674_v27 = vld [vmem:[%s3078_s20 + $0x10] sm:$0xff]  ;;  %s644_s30 = scalar_lea.vmem %s3593_s3, %s2659_s24  ;;  %s2862_s24 = scalar_lea.hbm %s3608_s18, 32 }
  0x24   : > { %883 = vmatpush.bf16.msra.mxu2 %v2676_v3  ;;  %v2660_v12 = vld [vmem:[%s3097_s25] sm:$0xff]  ;;  %v908_v16 = vperm.slane %v907_v15, 0  ;;  %v2669_v40 = vld [vmem:[%s3073_s26 + $0x18] sm:$0xff]  ;;  %v2661_v10 = vld [vmem:[%s3097_s25 + $0x8] sm:$0xff] }
  0x25   : > { %713 = vmatpush.bf16.msra.mxu0 %v2664_v11  ;;  %v2675_v43 = vld [vmem:[%s3078_s20 + $0x18] sm:$0xff]  ;;  %v2678_v51 = vld [vmem:[%s3598_s8] sm:$0xff]  ;;  %v2662_v11 = vld [vmem:[%s3097_s25 + $0x10] sm:$0xff]  ;;  %s2750_s20 = sshll.u32 %s3026_s0, 4 }
  0x26   : > { %2303 = vmatmul.msk.bf16.vlgmr.msra.gmra.mxu1 %vm693_vm0, %v2666_v4  ;;  %vm3105_vm2 = vcmp.eq.s32.totalorder %v908_v16, 1 }
  0x27   : > { %2331 = vmatmul.msk.bf16.vlgmr.msra.gmra.mxu2 %vm693_vm0, %v2672_v5  ;;  %1147 = vmatpush.bf16.msrb.mxu1 %v2679_v50 }
  0x28   : > { %2275 = vmatmul.msk.bf16.vlgmr.msra.gmra.mxu0 %vm693_vm0, %v2660_v12 }
  0x2b   : > { %1148 = vmatpush.bf16.msrb.mxu1 %v2678_v51 }
  0x36   : > { %2304 = vmatmul.msk.bf16.gmra.mxu1 %vm693_vm0, %v2667_v24 }
  0x37   : > { %2332 = vmatmul.msk.bf16.gmra.mxu2 %vm693_vm0, %v2673_v25 }
  0x38   : > { %2276 = vmatmul.msk.bf16.gmra.mxu0 %vm693_vm0, %v2661_v10 }
  0x46   : > { %2305 = vmatmul.msk.bf16.gmra.mxu1 %vm693_vm0, %v2668_v26 }
  0x47   : > { %2333 = vmatmul.msk.bf16.gmra.mxu2 %vm693_vm0, %v2674_v27 }
  0x48   : > { %2277 = vmatmul.msk.bf16.gmra.mxu0 %vm693_vm0, %v2662_v11 }
  0x56   : > { %2306 = vmatmul.msk.bf16.gmra.mxu1 %vm693_vm0, %v2669_v40 }
  0x57   : > { %2334 = vmatmul.msk.bf16.gmra.mxu2 %vm693_vm0, %v2675_v43 }
  0xa3   : > { %v800_v6 = vpop.f32.mrf.mxu1 }
  0xa5   : > { %v715_v28 = vpop.f32.mrf.mxu0 }
  0xaa   : > { %v885_v8 = vpop.f32.mrf.mxu2 }
  0xab   : > { %v802_v7 = vpop.f32.mrf.mxu1 }
  0xac   : > { %2335 = vmatpush.xpose.msk.msra.mxu3 %vm693_vm0, %v802_v7 }
  0xad   : > { %v717_v32 = vpop.f32.mrf.mxu0 }
  0xb0   : > { %2336 = vmatpush.xpose.msk.msra.mxu3 %vm693_vm0, %v800_v6 }
  0xb2   : > { %v887_v9 = vpop.f32.mrf.mxu2 }
  0xb3   : > { %2337 = vmatmul.msk.f32.vlgmr.msra.gmra.mxu3 %vm693_vm0, %v885_v8  ;;  %v805_v41 = vpop.f32.mrf.mxu1 }
  0xb4   : > { %990 = vmatpush.msrb.mxu3 %v717_v32 }
  0xb5   : > { %v720_v40 = vpop.f32.mrf.mxu0 }
  0xb6   : > { %991 = vmatpush.msrb.mxu3 %v715_v28 }
  0xba   : > { %v890_v44 = vpop.f32.mrf.mxu2 }
  0xbb   : > { %2338 = vmatmul.msk.f32.gmra.mxu3 %vm693_vm0, %v887_v9  ;;  %v807_v42 = vpop.f32.mrf.mxu1 }
  0xbc   : > { %2341 = vmatpush.xpose.msk.msra.mxu3 %vm693_vm0, %v807_v42 }
  0xc0   : > { %2342 = vmatpush.xpose.msk.msra.mxu3 %vm693_vm0, %v805_v41  ;;  %v722_v41 = vpop.f32.mrf.mxu0 }
  0xc2   : > { %v892_v46 = vpop.f32.mrf.mxu2 }
  0xc3   : > { %v810_v45 = vpop.f32.mrf.mxu1 }
  0xc8   : > { %v725_v42 = vpop.f32.mrf.mxu0 }
  0xca   : > { %v895_v49 = vpop.f32.mrf.mxu2 }
  0xcb   : > { %v812_v47 = vpop.f32.mrf.mxu1 }
  0xcc   : > { %2365 = vmatpush.xpose.msk.msrb.mxu2 %vm693_vm0, %v812_v47 }
  0xd0   : > { %2366 = vmatpush.xpose.msk.msrb.mxu2 %vm693_vm0, %v810_v45 }
  0xd2   : > { %v897_v57 = vpop.f32.mrf.mxu2 }
  0xd3   : > { %2367 = vmatmul.msk.f32.vlgmr.msrb.gmra.mxu2 %vm693_vm0, %v895_v49  ;;  %v815_v58 = vpop.f32.mrf.mxu1 }
  0xda   : > { %v900_v60 = vpop.f32.mrf.mxu2 }
  0xdb   : > { %2368 = vmatmul.msk.f32.gmra.mxu2 %vm693_vm0, %v897_v57  ;;  %v817_v59 = vpop.f32.mrf.mxu1 }
  0xdc   : > { %2380 = vmatpush.xpose.msk.msra.mxu1 %vm693_vm0, %v817_v59 }
  0xe0   : > { %2381 = vmatpush.xpose.msk.msra.mxu1 %vm693_vm0, %v815_v58 }
  0xe2   : > { %v902_v61 = vpop.f32.mrf.mxu2 }
 0x136   : > { %v939_v18 = vpop.f32.mrf.mxu3 }
 0x137   : > { %v945_v19 = vsel %vm3105_vm2, -1e+20, %v939_v18 }
 0x138   : > { %v948_v20 = vsel %vm947_vm3, %v945_v19, -inf }
 0x139   : > { %949 = vmax.xlane.f32.xlu0 %v948_v20 }
 0x13e   : > { %v942_v21 = vpop.f32.mrf.mxu3 }
 0x13f   : > { %v946_v22 = vsel %vm3105_vm2, -1e+20, %v942_v21 }
 0x140   : > { %v951_v23 = vsel %vm947_vm3, %v946_v22, -inf }
 0x141   : > { %952 = vmax.xlane.f32.xlu0 %v951_v23 }
 0x156   : > { %v1184_v62 = vpop.f32.mrf.mxu2 }
 0x157   : > { %v1190_v63 = vsel %vm3105_vm2, -1e+20, %v1184_v62 }
 0x158   : > { %v1192_v0 = vsel %vm947_vm3, %v1190_v63, -inf }
 0x1ac   : > { %v950_v29 = vpop.xlane.xlu0 %949 }
 0x1ad   : > { %v954_v30 = vsub.f32 %v945_v19, %v950_v29 }
 0x1af   : > { %v956_v31 = vmul.f32 1.442695, %v954_v30 }
 0x1b1   : > { %2800 = vpow2.f32 %v956_v31  ;;  %v1187_v31 = vpop.f32.mrf.mxu2 }
 0x1b4   : > { %v953_v33 = vpop.xlane.xlu0 %952 }
 0x1b5   : > { %v955_v34 = vsub.f32 %v946_v22, %v953_v33  ;;  %v2663_v22 = vld [vmem:[%s3097_s25 + $0x18] sm:$0xff]  ;;  %v1191_v33 = vsel %vm3105_vm2, -1e+20, %v1187_v31  ;;  %s622_s25 = sand.u32 1, %s2896_s28  }
 0x1b6   : > { %2278 = vmatmul.msk.bf16.gmra.mxu0 %vm693_vm0, %v2663_v22  ;;  %s2242_s7 = sshll.u32 %s622_s25, 4  ;;  %s2116_s0 = scalar_lea.sflag [#allocation3], %s622_s25 }
 0x1b7   : > { %v2801_v35 = vpop.eup %2800  ;;  %v958_v36 = vmul.f32 1.442695, %v955_v34  ;;  %s624_s1 = scalar_lea.vmem [#allocation2], %s2242_s7 }
 0x1b8   : > { %v960_v37 = vsel %vm947_vm3, %v2801_v35, 0.0  ;;  %s2128_s2 = sshll.u32 %s624_s1, 4  ;;  %s2129_s2 = int_to_ptr.vmem [resolvable:$true] %s2128_s2 }
 0x1b9   : > { %2802 = vpow2.f32 %v958_v36  ;;  %961 = vadd.xlane.f32.xlu1 %v960_v37  ;;  %v1195_v36 = vsel %vm947_vm3, %v1191_v33, -inf }
 0x1bf   : > { %v2803_v38 = vpop.eup %2802 }
 0x1c0   : > { %v963_v39 = vsel %vm947_vm3, %v2803_v38, 0.0 }
 0x1c1   : > { %964 = vadd.xlane.f32.xlu1 %v963_v39 }
 0x1c9   : > { %1193 = vmax.xlane.f32.xlu1 %v1192_v0 }
 0x22c   : > { %v962_v48 = vpop.xlane.xlu1 %961 }
 0x22d   : > { %2804 = vrcp.f32 %v962_v48 }
 0x233   : > { %v2805_v52 = vpop.eup %2804 }
 0x234   : > { %v965_v53 = vpop.xlane.xlu1 %964  ;;  %v968_v54 = vmul.f32 %v2805_v52, %v2801_v35 }
 0x235   : > { %2806 = vrcp.f32 %v965_v53 }
 0x236   : > { %2339 = vmatmul.msk.f32.vlgmr.msrb.gmra.mxu3 %vm947_vm3, %v968_v54 }
 0x237   : > { %1083 = vmatpush.msrb.mxu3 %v722_v41 }
 0x239   : > { %1084 = vmatpush.msrb.mxu3 %v720_v40  ;;  %v1409_v40 = vld [vmem:[%s644_s30] sm:$0xff] }
 0x23b   : > { %v2807_v55 = vpop.eup %2806 }
 0x23c   : > { %v969_v56 = vmul.f32 %v2807_v55, %v2803_v38  ;;  %v1194_v12 = vpop.xlane.xlu1 %1193 }
 0x23d   : > { %v1198_v15 = vsub.f32 %v1190_v63, %v1194_v12 }
 0x23e   : > { %2340 = vmatmul.msk.f32.gmra.mxu3 %vm947_vm3, %v969_v56 }
 0x23f   : > { %v1200_v19 = vmul.f32 1.442695, %v1198_v15 }
 0x246   : > { %2343 = vmatmul.msk.f32.vlgmr.msra.gmra.mxu3 %vm693_vm0, %v890_v44  ;;  %v727_v44 = vpop.f32.mrf.mxu0 }
 0x247   : > { %1234 = vmatpush.msra.mxu3 %v727_v44 }
 0x249   : > { %1235 = vmatpush.msra.mxu3 %v725_v42 }
 0x24e   : > { %2344 = vmatmul.msk.f32.gmra.mxu3 %vm693_vm0, %v892_v46  ;;  %v730_v49 = vpop.f32.mrf.mxu0 }
 0x256   : > { %v732_v58 = vpop.f32.mrf.mxu0 }
 0x257   : > { %1358 = vmatpush.msra.mxu2 %v732_v58 }
 0x259   : > { %1359 = vmatpush.msra.mxu2 %v730_v49  ;;  %v2907_v49 = vmov 128.0  }
 0x2b9   : > { %v993_v1 = vpop.f32.mrf.mxu3 }
 0x2c1   : > { %v996_v2 = vpop.f32.mrf.mxu3 }
 0x2c2   : > { %v999_v3 = vpack.c.bf16 %v996_v2, %v993_v1 }
 0x2c4   : > { %2364 = vmatmul.msk.bf16.vlgmr.msrb.gmra.mxu1 %vm693_vm0, %v999_v3 }
 0x2c9   : > { %v1033_v4 = vpop.f32.mrf.mxu3 }
 0x2ca   : > { %v1039_v5 = vsel %vm3105_vm2, -1e+20, %v1033_v4 }
 0x2cb   : > { %v1041_v6 = vsel %vm947_vm3, %v1039_v5, -inf }
 0x2cc   : > { %1042 = vmax.xlane.f32.xlu2 %v1041_v6  ;;  %v2680_v6 = vld [vmem:[%s3598_s8 + $0x10] sm:$0xff] }
 0x2d1   : > { %v1036_v7 = vpop.f32.mrf.mxu3 }
 0x2d2   : > { %v1040_v8 = vsel %vm3105_vm2, -1e+20, %v1036_v7 }
 0x2d3   : > { %v1044_v9 = vsel %vm947_vm3, %v1040_v8, -inf }
 0x2d4   : > { %1045 = vmax.xlane.f32.xlu2 %v1044_v9  ;;  %2382 = vmatmul.msk.f32.vlgmr.msra.gmra.mxu1 %vm693_vm0, %v900_v60  ;;  %v2683_v9 = vld [vmem:[%s3598_s8 + $0x28] sm:$0xff] }
 0x2dc   : > { %2383 = vmatmul.msk.f32.gmra.mxu1 %vm693_vm0, %v902_v61 }
 0x33f   : > { %v1043_v13 = vpop.xlane.xlu2 %1042 }
 0x340   : > { %v1047_v14 = vsub.f32 %v1039_v5, %v1043_v13  ;;  %v2681_v5 = vld [vmem:[%s3598_s8 + $0x18] sm:$0xff] }
 0x341   : > { %v3163_v16 = vpop.f32.mrf.mxu1  ;;  %1118 = vmatpush.bf16.msrb.mxu0 %v2681_v5  ;;  %v2717_v5 = vld [vmem:[%s3602_s12 + $0xf4] sm:$0xf0] }
 0x342   : > { %v1049_v18 = vmul.f32 1.442695, %v1047_v14 }
 0x344   : > { %2808 = vpow2.f32 %v1049_v18 }
 0x345   : > { %2810 = vpow2.f32 %v1200_v19  ;;  %1119 = vmatpush.bf16.msrb.mxu0 %v2680_v6 }
 0x347   : > { %v1046_v25 = vpop.xlane.xlu2 %1045 }
 0x348   : > { %v1048_v28 = vsub.f32 %v1040_v8, %v1046_v25  ;;  %v2685_v8 = vld [vmem:[%s3598_s8 + $0x38] sm:$0xff]  ;;  %v2682_v25 = vld [vmem:[%s3598_s8 + $0x20] sm:$0xff] }
 0x349   : > { %v3165_v20 = vpop.f32.mrf.mxu1  ;;  %1269 = vmatpush.bf16.msra.mxu0 %v2683_v9  ;;  %v2519_v9 = vld [vmem:[%s3602_s12 + $0xf8] sm:$0xf0] }
 0x34a   : > { %v2809_v21 = vpop.eup %2808  ;;  %v1051_v32 = vmul.f32 1.442695, %v1048_v28 }
 0x34b   : > { %v1053_v23 = vsel %vm947_vm3, %v2809_v21, 0.0  ;;  %v3169_v24 = vpop.eup %2810 }
 0x34c   : > { %1054 = vadd.xlane.f32.xlu1 %v1053_v23  ;;  %v1204_v27 = vsel %vm947_vm3, %v3169_v24, 0.0  ;;  %2812 = vpow2.f32 %v1051_v32 }
 0x34d   : > { %1270 = vmatpush.bf16.msra.mxu0 %v2682_v25 }
 0x351   : > { %v1308_v26 = vpop.f32.mrf.mxu1 }
 0x352   : > { %v1314_v29 = vsel %vm3105_vm2, -1e+20, %v1308_v26  ;;  %v2813_v38 = vpop.eup %2812 }
 0x353   : > { %v1316_v30 = vsel %vm947_vm3, %v1314_v29, -inf  ;;  %v1056_v39 = vsel %vm947_vm3, %v2813_v38, 0.0 }
 0x354   : > { %1205 = vadd.xlane.f32.xlu1 %v1204_v27  ;;  %1317 = vmax.xlane.f32.xlu0 %v1316_v30 }
 0x359   : > { %v1311_v34 = vpop.f32.mrf.mxu1 }
 0x35a   : > { %v1315_v35 = vsel %vm3105_vm2, -1e+20, %v1311_v34 }
 0x35b   : > { %v1319_v37 = vsel %vm947_vm3, %v1315_v35, -inf }
 0x35c   : > { %1196 = vmax.xlane.f32.xlu0 %v1195_v36  ;;  %1320 = vmax.xlane.f32.xlu2 %v1319_v37  ;;  %v2794_v37 = vld [vmem:[%s3599_s9] ss:$0 sm:$0xff] }
 0x364   : > { %1057 = vadd.xlane.f32.xlu2 %v1056_v39 }
 0x3bf   : > { %v1055_v43 = vpop.xlane.xlu1 %1054 }
 0x3c0   : > { %2814 = vrcp.f32 %v1055_v43 }
 0x3c6   : > { %v2815_v17 = vpop.eup %2814 }
 0x3c7   : > { %v1061_v45 = vmul.f32 %v2815_v17, %v2809_v21  ;;  %v1318_v46 = vpop.xlane.xlu0 %1317  ;;  %v1206_v62 = vpop.xlane.xlu1 %1205 }
 0x3c8   : > { %v1322_v47 = vsub.f32 %v1314_v29, %v1318_v46  ;;  %v1410_v46 = vld [vmem:[%s644_s30 + $0x8] sm:$0xff]  ;;  %s2127_s30 = scalar_lea.hbm %s3608_s18, %s2750_s20 }
 0x3c9   : > { %2345 = vmatmul.msk.f32.vlgmr.msrb.gmra.mxu3 %vm947_vm3, %v1061_v45  ;;  %s2130_s23 = sshll.u32 %s2127_s30, 4  ;;  %s2131_s23 = int_to_ptr.hbm [resolvable:$true] %s2130_s23 }
 0x3ca   : > { %v1324_v48 = vmul.f32 1.442695, %v1322_v47  ;;  %1393 = vmatpush.bf16.msrb.mxu3 %v2685_v8  ;;  %v2715_v8 = vld [vmem:[%s3602_s12 + $0xec] sm:$0xf]  ;;  %s2856_s21 = sshra.s32 %s2131_s23, 4  ;;  %s2857_s21 = int_to_ptr.hbm [resolvable:$true] %s2856_s21 }
 0x3cb   : > { %s2858_s19 = scalar_lea.hbm %s2857_s21, 16  ;;  %p2863_p0 = scmp.lt.s32.totalorder %s2857_s21, %s3608_s18 }
 0x3cc   : > { %2816 = vpow2.f32 %v1324_v48  ;;  %p2859_p11 = scmp.ne.s32.totalorder %s2857_s21, %s2858_s19  ;;  %p2864_p1 = scmp.lt.s32.totalorder %s2862_s24, %s2858_s19 }
 0x3ce   : > { %p2860_p12 = pnand %p2859_p11, %p3043_p5  ;;  %p2865_p2 = por %p2864_p1, %p2863_p0 }
 0x3cf   : > { %v1197_v50 = vpop.xlane.xlu0 %1196  ;;  %v1321_v51 = vpop.xlane.xlu2 %1320 }
 0x3d0   : > { %v1199_v52 = vsub.f32 %v1191_v33, %v1197_v50  ;;  %v1323_v53 = vsub.f32 %v1315_v35, %v1321_v51  ;;  %p2861_p13 = pneg %p2860_p12 }
 0x3d2   : > { %v2817_v54 = vpop.eup %2816  ;;  %v1202_v55 = vmul.f32 1.442695, %v1199_v52  ;;  %v1326_v56 = vmul.f32 1.442695, %v1323_v53  ;;  %p2866_p3 = pnand %p2865_p2, %p2861_p13 }
 0x3d3   : > { %v1328_v57 = vsel %vm947_vm3, %v2817_v54, 0.0 }
 0x3d4   : > { %2818 = vpow2.f32 %v1202_v55  ;;  %1329 = vadd.xlane.f32.xlu0 %v1328_v57 }
 0x3d5   : > { %2820 = vpow2.f32 %v1326_v56 }
 0x3d7   : > { %v1058_v59 = vpop.xlane.xlu2 %1057 }
 0x3d8   : > { %2822 = vrcp.f32 %v1058_v59 }
 0x3d9   : > { %2824 = vrcp.f32 %v1206_v62 }
 0x3da   : > { %v2819_v60 = vpop.eup %2818 }
 0x3db   : > { %v2821_v61 = vpop.eup %2820  ;;  %v1207_v63 = vsel %vm947_vm3, %v2819_v60, 0.0 }
 0x3dc   : > { %1208 = vadd.xlane.f32.xlu0 %v1207_v63  ;;  %v1331_v0 = vsel %vm947_vm3, %v2821_v61, 0.0  ;;  %v2509_v63 = vld [vmem:[%s3602_s12 + $0xe0] sm:$0xf] }
 0x3dd   : > { %1332 = vadd.xlane.f32.xlu2 %v1331_v0  ;;  %v2716_v0 = vld [vmem:[%s3602_s12 + $0xec] sm:$0xf0] }
 0x3de   : > { %v2823_v1 = vpop.eup %2822 }
 0x3df   : > { %v1062_v2 = vmul.f32 %v2823_v1, %v2813_v38  ;;  %v2825_v3 = vpop.eup %2824  ;;  %v2714_v1 = vld [vmem:[%s3602_s12 + $0xe4] sm:$0xf] }
 0x3e0   : > { %v1212_v4 = vmul.f32 %v2825_v3, %v3169_v24  ;;  %v2684_v24 = vld [vmem:[%s3598_s8 + $0x30] sm:$0xff] }
 0x3e1   : > { %2346 = vmatmul.msk.f32.gmra.mxu3 %vm947_vm3, %v1062_v2  ;;  %v2510_v2 = vor.u32 %v2716_v0, %v2509_v63  ;;  %v2511_v3 = vld [vmem:[%s3602_s12 + $0xf0] sm:$0xf0]  ;;  %v2696_v63 = vld [vmem:[%s3602_s12 + $0x4c] sm:$0xf0]  ;;  %v2694_v0 = vld [vmem:[%s3602_s12 + $0x44] sm:$0xf] }
 0x3e2   : > { %1394 = vmatpush.bf16.msrb.mxu3 %v2684_v24  ;;  %v2514_v6 = vor.u32 %v2714_v1, %v2511_v3  ;;  %v2503_v24 = vld [vmem:[%s3602_s12 + $0xd8] sm:$0xf0]  ;;  %v2437_v3 = vld [vmem:[%s3602_s12 + $0x48] sm:$0xf] }
 0x3e4   : > { %1689 = vmatpush.bf16.msrb.mxu1 %v2514_v6 }
 0x3e9   : > { %2369 = vmatmul.msk.f32.vlgmr.msra.gmra.mxu3 %vm947_vm3, %v1212_v4  ;;  %v2517_v4 = vld [vmem:[%s3602_s12 + $0xe8] sm:$0xf] }
 0x447   : > { %v1330_v7 = vpop.xlane.xlu0 %1329 }
 0x448   : > { %2826 = vrcp.f32 %v1330_v7  ;;  %v2518_v7 = vor.u32 %v2717_v5, %v2517_v4  ;;  %v2697_v4 = vld [vmem:[%s3602_s12 + $0x54] sm:$0xf0] }
 0x449   : > { %v2438_v6 = vor.u32 %v2697_v4, %v2437_v3 }
 0x44a   : > { %1703 = vmatpush.bf16.msrb.mxu2 %v2518_v7  ;;  %v2695_v7 = vld [vmem:[%s3602_s12 + $0x4c] sm:$0xf] }
 0x44c   : > { %v1086_v21 = vpop.f32.mrf.mxu3 }
 0x44e   : > { %v2827_v10 = vpop.eup %2826 }
 0x44f   : > { %v1336_v11 = vmul.f32 %v2827_v10, %v2817_v54  ;;  %v1209_v12 = vpop.xlane.xlu0 %1208  ;;  %v2522_v10 = vor.u32 %v2715_v8, %v2519_v9  ;;  %v2439_v8 = vld [vmem:[%s3602_s12 + $0x58] sm:$0xf0] }
 0x450   : > { %2828 = vrcp.f32 %v1209_v12  ;;  %v1333_v13 = vpop.xlane.xlu2 %1332  ;;  %v2712_v12 = vld [vmem:[%s3602_s12 + $0xcc] sm:$0xf0]  ;;  %v2442_v9 = vor.u32 %v2695_v7, %v2439_v8 }
 0x451   : > { %2830 = vrcp.f32 %v1333_v13  ;;  %2384 = vmatmul.msk.f32.vlgmr.msra.gmra.mxu2 %vm947_vm3, %v1336_v11  ;;  %v2493_v11 = vld [vmem:[%s3602_s12 + $0xc0] sm:$0xf]  ;;  %v2710_v13 = vld [vmem:[%s3602_s12 + $0xc4] sm:$0xf]  ;;  %1717 = vmatpush.bf16.msra.mxu3 %v2522_v10 }
 0x452   : > { %2832 = vrcp.f32 %v2907_v49  ;;  %v2700_v49 = vld [vmem:[%s3602_s12 + $0x6c] sm:$0xf0]  ;;  %v2413_v10 = vld [vmem:[%s3602_s12 + $0x20] sm:$0xf] }
 0x456   : > { %v2829_v14 = vpop.eup %2828 }
 0x457   : > { %v2831_v15 = vpop.eup %2830  ;;  %v1213_v18 = vmul.f32 %v2829_v14, %v2819_v60  ;;  %v2494_v14 = vor.u32 %v2712_v12, %v2493_v11  ;;  %v2692_v11 = vld [vmem:[%s3602_s12 + $0x2c] sm:$0xf0]  ;;  %v2690_v12 = vld [vmem:[%s3602_s12 + $0x24] sm:$0xf] }
 0x458   : > { %v1337_v19 = vmul.f32 %v2831_v15, %v2821_v61  ;;  %v2833_v50 = vpop.eup %2832  ;;  %v2495_v15 = vld [vmem:[%s3602_s12 + $0xd0] sm:$0xf0] }
 0x459   : > { %2370 = vmatmul.msk.f32.gmra.mxu3 %vm947_vm3, %v1213_v18  ;;  %v1420_v51 = vmul.f32 128.0, %v2833_v50  ;;  %vm1424_vm4 = vweird.f32 %v2833_v50  ;;  %v2501_v18 = vld [vmem:[%s3602_s12 + $0xc8] sm:$0xf] }
 0x45a   : > { %2385 = vmatmul.msk.f32.gmra.mxu2 %vm947_vm3, %v1337_v19  ;;  %v2713_v19 = vld [vmem:[%s3602_s12 + $0xd4] sm:$0xf0] }
 0x45b   : > { %v1421_v52 = vsub.f32 1.0, %v1420_v51 }
 0x45d   : > { %v1422_v53 = vmul.f32 %v2833_v50, %v1421_v52  ;;  %v2447_v52 = vld [vmem:[%s3602_s12 + $0x70] sm:$0xf0] }
 0x45f   : > { %v1423_v54 = vadd.f32 %v2833_v50, %v1422_v53  ;;  %v2453_v53 = vld [vmem:[%s3602_s12 + $0x68] sm:$0xf] }
 0x461   : > { %v3224_v55 = vsel %vm1424_vm4, %v2833_v50, %v1423_v54  ;;  %v2698_v50 = vld [vmem:[%s3602_s12 + $0x64] sm:$0xf]  ;;  %v2701_v54 = vld [vmem:[%s3602_s12 + $0x74] sm:$0xf0] }
 0x464   : > { %v1089_v22 = vpop.f32.mrf.mxu3 }
 0x465   : > { %v1092_v23 = vpack.c.bf16 %v1089_v22, %v1086_v21  ;;  %v2498_v21 = vor.u32 %v2710_v13, %v2495_v15  ;;  %v2502_v22 = vor.u32 %v2713_v19, %v2501_v18  ;;  %v2414_v13 = vor.u32 %v2692_v11, %v2413_v10  ;;  %v2421_v15 = vld [vmem:[%s3602_s12 + $0x28] sm:$0xf]  ;;  %v2693_v18 = vld [vmem:[%s3602_s12 + $0x34] sm:$0xf0]  ;;  %v2796_v11 = vld [vmem:[%s3601_s11] ss:$0 sm:$0xff] }
 0x467   : > { %2355 = vmatmul.msk.bf16.vlgmr.msrb.gmra.mxu0 %vm693_vm0, %v1092_v23  ;;  %v2711_v23 = vld [vmem:[%s3602_s12 + $0xcc] sm:$0xf]  ;;  %1690 = vmatpush.bf16.msrb.mxu1 %v2498_v21  ;;  %v2422_v21 = vor.u32 %v2693_v18, %v2421_v15  ;;  %v2729_v15 = vld [vmem:[%s3604_s14 + $0x58] sm:$0xff]  ;;  %v2738_v18 = vld [vmem:[%s3604_s14 + $0xa0] sm:$0xff] }
 0x468   : > { %1675 = vmatpush.bf16.msrb.mxu0 %v2510_v2  ;;  %v2506_v25 = vor.u32 %v2711_v23, %v2503_v24  ;;  %1704 = vmatpush.bf16.msrb.mxu2 %v2502_v22  ;;  %v2431_v2 = vld [vmem:[%s3602_s12 + $0x50] sm:$0xf0]  ;;  %v2691_v22 = vld [vmem:[%s3602_s12 + $0x2c] sm:$0xf]  ;;  %v2423_v23 = vld [vmem:[%s3602_s12 + $0x38] sm:$0xf0] }
 0x469   : > { %v2434_v5 = vor.u32 %v2694_v0, %v2431_v2  ;;  %v2397_v24 = vld [vmem:[%s3602_s12] sm:$0xf] }
 0x46a   : > { %1718 = vmatpush.bf16.msra.mxu3 %v2506_v25 }
 0x46c   : > { %v1237_v26 = vpop.f32.mrf.mxu3  ;;  %1676 = vmatpush.bf16.msrb.mxu0 %v2494_v14  ;;  %v2415_v14 = vld [vmem:[%s3602_s12 + $0x30] sm:$0xf0] }
 0x46d   : > { %v2418_v19 = vor.u32 %v2690_v12, %v2415_v14 }
 0x4d4   : > { %v1361_v27 = vpop.f32.mrf.mxu2 }
 0x4dc   : > { %v1240_v28 = vpop.f32.mrf.mxu3 }
 0x4dd   : > { %v1243_v29 = vpack.c.bf16 %v1240_v28, %v1237_v26  ;;  %v1364_v30 = vpop.f32.mrf.mxu2  ;;  %v2477_v26 = vld [vmem:[%s3602_s12 + $0xa0] sm:$0xf]  ;;  %v2706_v28 = vld [vmem:[%s3602_s12 + $0xa4] sm:$0xf] }
 0x4de   : > { %v1367_v31 = vpack.c.bf16 %v1364_v30, %v1361_v27  ;;  %v2708_v27 = vld [vmem:[%s3602_s12 + $0xac] sm:$0xf0]  ;;  %v2479_v30 = vld [vmem:[%s3602_s12 + $0xb0] sm:$0xf0] }
 0x4df   : > { %2379 = vmatmul.msk.bf16.vlgmr.msra.gmra.mxu0 %vm693_vm0, %v1243_v29  ;;  %v2478_v29 = vor.u32 %v2708_v27, %v2477_v26  ;;  %v2426_v26 = vor.u32 %v2691_v22, %v2423_v23  ;;  %v2688_v27 = vld [vmem:[%s3602_s12 + $0xc] sm:$0xf0]  ;;  %v2737_v23 = vld [vmem:[%s3604_s14 + $0x98] sm:$0xff] }
 0x4e0   : > { %2394 = vmatmul.msk.bf16.vlgmr.msrb.gmra.mxu3 %vm693_vm0, %v1367_v31  ;;  %v2485_v31 = vld [vmem:[%s3602_s12 + $0xa8] sm:$0xf]  ;;  %v2728_v22 = vld [vmem:[%s3604_s14 + $0x50] sm:$0xff] }
 0x4e1   : > { %1677 = vmatpush.bf16.msrb.mxu0 %v2478_v29  ;;  %v2399_v29 = vld [vmem:[%s3602_s12 + $0x10] sm:$0xf0] }
 0x4e4   : > { %v1121_v32 = vpop.f32.mrf.mxu0 }
 0x4e5   : > { %v1151_v35 = vadd.f32 %v3163_v16, %v1121_v32  ;;  %v2709_v32 = vld [vmem:[%s3602_s12 + $0xb4] sm:$0xf0] }
 0x4ec   : > { %v1123_v33 = vpop.f32.mrf.mxu0 }
 0x4ed   : > { %v1153_v43 = vadd.f32 %v3165_v20, %v1123_v33  ;;  %v2482_v33 = vor.u32 %v2706_v28, %v2479_v30  ;;  %v2686_v28 = vld [vmem:[%s3602_s12 + $0x4] sm:$0xf] }
 0x4ef   : > { %1691 = vmatpush.bf16.msrb.mxu1 %v2482_v33  ;;  %v2405_v33 = vld [vmem:[%s3602_s12 + $0x8] sm:$0xf] }
 0x55c   : > { %v1272_v34 = vpop.f32.mrf.mxu0 }
 0x55d   : > { %v1277_v36 = vadd.f32 %v1272_v34, %v1151_v35  ;;  %v2486_v34 = vor.u32 %v2709_v32, %v2485_v31  ;;  %v2707_v35 = vld [vmem:[%s3602_s12 + $0xac] sm:$0xf]  ;;  %v2398_v31 = vor.u32 %v2688_v27, %v2397_v24  ;;  %v2402_v32 = vor.u32 %v2686_v28, %v2399_v29  ;;  %v2745_v24 = vld [vmem:[%s3604_s14 + $0xd8] sm:$0xff]  ;;  %v2736_v27 = vld [vmem:[%s3604_s14 + $0x90] sm:$0xff] }
 0x55e   : > { %v2744_v28 = vld [vmem:[%s3604_s14 + $0xd0] sm:$0xff]  ;;  %v2718_v29 = vld [vmem:[%s3604_s14] sm:$0xff] }
 0x55f   : > { %1705 = vmatpush.bf16.msrb.mxu2 %v2486_v34  ;;  %v2689_v34 = vld [vmem:[%s3602_s12 + $0x14] sm:$0xf0] }
 0x563   : > { %v1396_v38 = vpop.f32.mrf.mxu3 }
 0x564   : > { %v1401_v39 = vadd.f32 %v1396_v38, %v1277_v36  ;;  %v1274_v42 = vpop.f32.mrf.mxu0  ;;  %v2487_v36 = vld [vmem:[%s3602_s12 + $0xb8] sm:$0xf0]  ;;  %v2461_v38 = vld [vmem:[%s3602_s12 + $0x80] sm:$0xf] }
 0x565   : > { %v1278_v17 = vadd.f32 %v1274_v42, %v1153_v43  ;;  %v2463_v42 = vld [vmem:[%s3602_s12 + $0x90] sm:$0xf0]  ;;  %v2469_v43 = vld [vmem:[%s3602_s12 + $0x88] sm:$0xf] }
 0x566   : > { %v1407_v41 = vadd.f32 %v2794_v37, %v1401_v39  ;;  %v2704_v39 = vld [vmem:[%s3602_s12 + $0x8c] sm:$0xf0] }
 0x568   : > { %v1411_v44 = vadd.f32 %v1409_v40, %v1407_v41  ;;  %v2702_v40 = vld [vmem:[%s3602_s12 + $0x84] sm:$0xf]  ;;  %v2462_v41 = vor.u32 %v2704_v39, %v2461_v38 }
 0x56a   : > { %1415 = vadd.xlane.f32.xlu1 %v1411_v44  ;;  %1678 = vmatpush.bf16.msrb.mxu0 %v2462_v41  ;;  %v2725_v41 = vld [vmem:[%s3604_s14 + $0x38] sm:$0xff] }
 0x56b   : > { %v1398_v16 = vpop.f32.mrf.mxu3 }
 0x56c   : > { %v1402_v45 = vadd.f32 %v1398_v16, %v1278_v17  ;;  %v2466_v17 = vor.u32 %v2702_v40, %v2463_v42  ;;  %v2733_v42 = vld [vmem:[%s3604_s14 + $0x78] sm:$0xff] }
 0x56e   : > { %v1408_v47 = vadd.f32 %v2794_v37, %v1402_v45  ;;  %v2490_v37 = vor.u32 %v2707_v35, %v2487_v36  ;;  %v2703_v45 = vld [vmem:[%s3602_s12 + $0x8c] sm:$0xf]  ;;  %1692 = vmatpush.bf16.msrb.mxu1 %v2466_v17  ;;  %v2406_v36 = vor.u32 %v2689_v34, %v2405_v33  ;;  %v2749_v17 = vld [vmem:[%s3604_s14 + $0xf8] sm:$0xff]  ;;  %v2734_v33 = vld [vmem:[%s3604_s14 + $0x80] sm:$0xff] }
 0x56f   : > { %v2687_v35 = vld [vmem:[%s3602_s12 + $0xc] sm:$0xf]  ;;  %v2742_v34 = vld [vmem:[%s3604_s14 + $0xc0] sm:$0xff] }
 0x570   : > { %v1412_v48 = vadd.f32 %v1410_v46, %v1408_v47  ;;  %1719 = vmatpush.bf16.msra.mxu3 %v2490_v37  ;;  %v2471_v46 = vld [vmem:[%s3602_s12 + $0x98] sm:$0xf0] }
 0x571   : > { %v2474_v47 = vor.u32 %v2703_v45, %v2471_v46  ;;  %v2407_v37 = vld [vmem:[%s3602_s12 + $0x18] sm:$0xf0]  ;;  %v2732_v45 = vld [vmem:[%s3604_s14 + $0x70] sm:$0xff] }
 0x572   : > { %1417 = vadd.xlane.f32.xlu2 %v1412_v48  ;;  %v2410_v39 = vor.u32 %v2687_v35, %v2407_v37  ;;  %v1505_v35 = vld [vmem:[%s3603_s13] sm:$0xf] }
 0x574   : > { %1720 = vmatpush.bf16.msra.mxu3 %v2474_v47 }
 0x5dd   : > { %v1416_v20 = vpop.xlane.xlu1 %1415 }
 0x5de   : > { %v1426_v56 = vmul.f32 %v3224_v55, %v1416_v20  ;;  %v2450_v20 = vor.u32 %v2698_v50, %v2447_v52  ;;  %v2723_v52 = vld [vmem:[%s3604_s14 + $0x28] sm:$0xff] }
 0x5e0   : > { %v3227_v57 = vsub.f32 %v1411_v44, %v1426_v56  ;;  %v2705_v44 = vld [vmem:[%s3602_s12 + $0x94] sm:$0xf0]  ;;  %v2454_v56 = vor.u32 %v2701_v54, %v2453_v53  ;;  %1693 = vmatpush.bf16.msrb.mxu1 %v2450_v20  ;;  %v2731_v53 = vld [vmem:[%s3604_s14 + $0x68] sm:$0xff] }
 0x5e1   : > { %v2470_v16 = vor.u32 %v2705_v44, %v2469_v43  ;;  %v2741_v44 = vld [vmem:[%s3604_s14 + $0xb8] sm:$0xff]  ;;  %v2739_v54 = vld [vmem:[%s3604_s14 + $0xa8] sm:$0xff] }
 0x5e2   : > { %v1430_v58 = vmul.f32 %v3227_v57, %v3227_v57  ;;  %v2747_v20 = vld [vmem:[%s3604_s14 + $0xe8] sm:$0xff] }
 0x5e3   : > { %1706 = vmatpush.bf16.msrb.mxu2 %v2470_v16  ;;  %v2724_v16 = vld [vmem:[%s3604_s14 + $0x30] sm:$0xff] }
 0x5e4   : > { %1432 = vadd.xlane.f32.xlu0 %v1430_v58  ;;  %v2699_v58 = vld [vmem:[%s3602_s12 + $0x6c] sm:$0xf]  ;;  %1694 = vmatpush.bf16.msrb.mxu1 %v2434_v5 }
 0x5e5   : > { %v1418_v59 = vpop.xlane.xlu2 %1417 }
 0x5e6   : > { %v1427_v60 = vmul.f32 %v3224_v55, %v1418_v59  ;;  %v2455_v59 = vld [vmem:[%s3602_s12 + $0x78] sm:$0xf0] }
 0x5e7   : > { %1707 = vmatpush.bf16.msrb.mxu2 %v2454_v56 }
 0x5e8   : > { %v3232_v61 = vsub.f32 %v1412_v48, %v1427_v60  ;;  %v2445_v48 = vld [vmem:[%s3602_s12 + $0x60] sm:$0xf]  ;;  %v2458_v60 = vor.u32 %v2699_v58, %v2455_v59  ;;  %1695 = vmatpush.bf16.msrb.mxu1 %v2418_v19 }
 0x5e9   : > { %v2446_v51 = vor.u32 %v2700_v49, %v2445_v48  ;;  %v2740_v48 = vld [vmem:[%s3604_s14 + $0xb0] sm:$0xff]  ;;  %v2722_v59 = vld [vmem:[%s3604_s14 + $0x20] sm:$0xff] }
 0x5ea   : > { %v1431_v62 = vmul.f32 %v3232_v61, %v3232_v61  ;;  %1721 = vmatpush.bf16.msra.mxu3 %v2458_v60  ;;  %v2748_v49 = vld [vmem:[%s3604_s14 + $0xf0] sm:$0xff]  ;;  %v2730_v60 = vld [vmem:[%s3604_s14 + $0x60] sm:$0xff] }
 0x5eb   : > { %1679 = vmatpush.bf16.msrb.mxu0 %v2446_v51  ;;  %1708 = vmatpush.bf16.msrb.mxu2 %v2438_v6  ;;  %v2795_v6 = vld [vmem:[%s3600_s10] ss:$0 sm:$0xff] }
 0x5ec   : > { %1434 = vadd.xlane.f32.xlu1 %v1431_v62  ;;  %v2429_v62 = vld [vmem:[%s3602_s12 + $0x40] sm:$0xf]  ;;  %1696 = vmatpush.bf16.msrb.mxu1 %v2402_v32  ;;  %v2743_v32 = vld [vmem:[%s3604_s14 + $0xc8] sm:$0xff] }
 0x5ed   : > { %v2430_v1 = vor.u32 %v2696_v63, %v2429_v62  ;;  %v2746_v19 = vld [vmem:[%s3604_s14 + $0xe0] sm:$0xff] }
 0x5ee   : > { %1722 = vmatpush.bf16.msra.mxu3 %v2442_v9 }
 0x5ef   : > { %1680 = vmatpush.bf16.msrb.mxu0 %v2430_v1  ;;  %1709 = vmatpush.bf16.msrb.mxu2 %v2422_v21  ;;  %v2720_v21 = vld [vmem:[%s3604_s14 + $0x10] sm:$0xff] }
 0x5f0   : > { %2017 = vmatpush.bf16.msra.mxu1 %v2733_v42 }
 0x5f2   : > { %1723 = vmatpush.bf16.msra.mxu3 %v2426_v26  ;;  %v2727_v26 = vld [vmem:[%s3604_s14 + $0x48] sm:$0xff] }
 0x5f3   : > { %1681 = vmatpush.bf16.msrb.mxu0 %v2414_v13  ;;  %1710 = vmatpush.bf16.msrb.mxu2 %v2406_v36 }
 0x5f4   : > { %2018 = vmatpush.bf16.msra.mxu1 %v2732_v45 }
 0x5f6   : > { %1724 = vmatpush.bf16.msra.mxu3 %v2410_v39  ;;  %v1508_v39 = vperm.slane %v1505_v35, 1 }
 0x5f7   : > { %1682 = vmatpush.bf16.msrb.mxu0 %v2398_v31  ;;  %2031 = vmatpush.bf16.msra.mxu2 %v2741_v44  ;;  %v2735_v31 = vld [vmem:[%s3604_s14 + $0x88] sm:$0xff] }
 0x5f8   : > { %2019 = vmatpush.bf16.msra.mxu1 %v2731_v53 }
 0x5fa   : > { %2045 = vmatpush.bf16.msrb.mxu3 %v2749_v17 }
 0x5fb   : > { %2003 = vmatpush.bf16.msra.mxu0 %v2725_v41  ;;  %2032 = vmatpush.bf16.msra.mxu2 %v2740_v48 }
 0x5fc   : > { %2020 = vmatpush.bf16.msra.mxu1 %v2730_v60 }
 0x5fe   : > { %2046 = vmatpush.bf16.msrb.mxu3 %v2748_v49 }
 0x5ff   : > { %2004 = vmatpush.bf16.msra.mxu0 %v2724_v16  ;;  %2033 = vmatpush.bf16.msra.mxu2 %v2739_v54 }
 0x600   : > { %2021 = vmatpush.bf16.msra.mxu1 %v2729_v15 }
 0x602   : > { %2047 = vmatpush.bf16.msrb.mxu3 %v2747_v20 }
 0x603   : > { %2005 = vmatpush.bf16.msra.mxu0 %v2723_v52  ;;  %2034 = vmatpush.bf16.msra.mxu2 %v2738_v18 }
 0x604   : > { %2022 = vmatpush.bf16.msra.mxu1 %v2728_v22 }
 0x606   : > { %2048 = vmatpush.bf16.msrb.mxu3 %v2746_v19 }
 0x607   : > { %2006 = vmatpush.bf16.msra.mxu0 %v2722_v59  ;;  %2035 = vmatpush.bf16.msra.mxu2 %v2737_v23 }
 0x608   : > { %2023 = vmatpush.bf16.msra.mxu1 %v2727_v26 }
 0x60a   : > { %2049 = vmatpush.bf16.msrb.mxu3 %v2745_v24 }
 0x60b   : > { %2036 = vmatpush.bf16.msra.mxu2 %v2736_v27 }
 0x60e   : > { %2050 = vmatpush.bf16.msrb.mxu3 %v2744_v28 }
 0x60f   : > { %2037 = vmatpush.bf16.msra.mxu2 %v2735_v31 }
 0x612   : > { %2051 = vmatpush.bf16.msrb.mxu3 %v2743_v32 }
 0x613   : > { %2038 = vmatpush.bf16.msra.mxu2 %v2734_v33 }
 0x616   : > { %2052 = vmatpush.bf16.msrb.mxu3 %v2742_v34 }
 0x657   : > { %v1433_v25 = vpop.xlane.xlu0 %1432 }
 0x658   : > { %v1436_v30 = vmul.f32 %v1433_v25, %v3224_v55  ;;  %v2719_v25 = vld [vmem:[%s3604_s14 + $0x8] sm:$0xff] }
 0x65a   : > { %v1438_v38 = vadd.f32 1e-05, %v1436_v30  ;;  %v2726_v30 = vld [vmem:[%s3604_s14 + $0x40] sm:$0xff] }
 0x65b   : > { %2024 = vmatpush.bf16.msra.mxu1 %v2726_v30 }
 0x65c   : > { %2834 = vrsqrt.f32 %v1438_v38  ;;  %vm1446_vm6 = vweird.f32 %v1438_v38 }
 0x65f   : > { %v1435_v40 = vpop.xlane.xlu1 %1434 }
 0x660   : > { %v1437_v43 = vmul.f32 %v1435_v40, %v3224_v55 }
 0x662   : > { %v2835_v46 = vpop.eup %2834  ;;  %v1439_v47 = vadd.f32 1e-05, %v1437_v43 }
 0x663   : > { %v1441_v50 = vmul.f32 %v2835_v46, %v1438_v38  ;;  %vm1447_vm5 = vweird.f32 %v2835_v46  ;;  %v1507_v38 = vperm.slane %v1505_v35, 0 }
 0x664   : > { %2836 = vrsqrt.f32 %v1439_v47  ;;  %vm1448_vm7 = vmor %vm1446_vm6, %vm1447_vm5  ;;  %vm1456_vm9 = vweird.f32 %v1439_v47 }
 0x665   : > { %v1442_v51 = vmul.f32 %v2835_v46, %v1441_v50 }
 0x667   : > { %v1443_v56 = vmul.f32 0.5, %v1442_v51 }
 0x669   : > { %v1444_v58 = vsub.f32 1.5, %v1443_v56 }
 0x66a   : > { %v2837_v62 = vpop.eup %2836 }
 0x66b   : > { %v1445_v63 = vmul.f32 %v2835_v46, %v1444_v58  ;;  %v1451_v0 = vmul.f32 %v2837_v62, %v1439_v47  ;;  %vm1457_vm8 = vweird.f32 %v2837_v62  ;;  %v1510_v47 = vperm.slane %v1505_v35, 3 }
 0x66c   : > { %vm1458_vm10 = vmor %vm1456_vm9, %vm1457_vm8 }
 0x66d   : > { %v1452_v1 = vmul.f32 %v2837_v62, %v1451_v0  ;;  %v1449_v2 = vsel %vm1448_vm7, %v2835_v46, %v1445_v63  ;;  %v1509_v46 = vperm.slane %v1505_v35, 2 }
 0x66e   : > { %v1460_v5 = vmul.f32 %v1449_v2, %v3227_v57 }
 0x66f   : > { %v1453_v3 = vmul.f32 0.5, %v1452_v1 }
 0x670   : > { %v1465_v10 = vmul.f32 %v2795_v6, %v1460_v5  ;;  %v2797_v5 = vld [vmem:[%s3605_s15] ss:$0 sm:$0xff] }
 0x671   : > { %v1454_v4 = vsub.f32 1.5, %v1453_v3 }
 0x672   : > { %v3480_v13 = vadd.f32 %v2796_v11, %v1465_v10 }
 0x673   : > { %v1455_v7 = vmul.f32 %v2837_v62, %v1454_v4 }
 0x675   : > { %v1459_v8 = vsel %vm1458_vm10, %v2837_v62, %v1455_v7 }
 0x676   : > { %v1461_v9 = vmul.f32 %v1459_v8, %v3232_v61  ;;  %v2721_v61 = vld [vmem:[%s3604_s14 + $0x18] sm:$0xff] }
 0x677   : > { %2007 = vmatpush.bf16.msra.mxu0 %v2721_v61 }
 0x678   : > { %v1466_v12 = vmul.f32 %v2795_v6, %v1461_v9 }
 0x67a   : > { %v3482_v14 = vadd.f32 %v2796_v11, %v1466_v12 }
 0x67b   : > { %2008 = vmatpush.bf16.msra.mxu0 %v2720_v21 }
 0x67c   : > { %v1472_v57 = vpack.c.bf16 %v3482_v14, %v3480_v13 }
 0x67e   : > { %1683 = vmatmul.bf16.vlgmr.msrb.gmra.mxu0 %v1472_v57  ;;  %1697 = vmatmul.bf16.vlgmr.msrb.gmra.mxu1 %v1472_v57 }
 0x67f   : > { %1711 = vmatmul.bf16.vlgmr.msrb.gmra.mxu2 %v1472_v57  ;;  %1725 = vmatmul.bf16.vlgmr.msra.gmra.mxu3 %v1472_v57 }
 0x680   : > { %2009 = vmatpush.bf16.msra.mxu0 %v2719_v25 }
 0x684   : > { %2010 = vmatpush.bf16.msra.mxu0 %v2718_v29 }
 0x6fb   : > { %v1684_v36 = vpop.f32.mrf.mxu0  ;;  %v1698_v37 = vpop.f32.mrf.mxu1 }
 0x6fc   : > { %v1685_v40 = vadd.f32 %v1684_v36, %v1507_v38  ;;  %v1699_v41 = vadd.f32 %v1698_v37, %v1508_v39 }
 0x6fe   : > { %v1731_v48 = vmax.f32 %v1685_v40, 0.0  ;;  %v1732_v49 = vmax.f32 %v1699_v41, 0.0 }
 0x702   : > { %v1712_v42 = vpop.f32.mrf.mxu2  ;;  %v1726_v43 = vpop.f32.mrf.mxu3 }
 0x703   : > { %v1686_v44 = vpop.f32.mrf.mxu0  ;;  %v1700_v17 = vpop.f32.mrf.mxu1  ;;  %v1713_v54 = vadd.f32 %v1712_v42, %v1509_v46  ;;  %v1727_v20 = vadd.f32 %v1726_v43, %v1510_v47 }
 0x704   : > { %v1687_v16 = vadd.f32 %v1686_v44, %v1507_v38  ;;  %v1701_v45 = vadd.f32 %v1700_v17, %v1508_v39 }
 0x705   : > { %v1733_v62 = vmax.f32 %v1713_v54, 0.0  ;;  %v1734_v63 = vmax.f32 %v1727_v20, 0.0 }
 0x706   : > { %v1735_v50 = vmax.f32 %v1687_v16, 0.0  ;;  %v1736_v51 = vmax.f32 %v1701_v45, 0.0  ;;  %v2798_v16 = vld [vmem:[%s3606_s16] ss:$0 sm:$0xff] }
 0x708   : > { %v1739_v52 = vpack.c.bf16 %v1735_v50, %v1731_v48  ;;  %v1740_v53 = vpack.c.bf16 %v1736_v51, %v1732_v49 }
 0x70a   : > { %v1714_v56 = vpop.f32.mrf.mxu2  ;;  %v1728_v58 = vpop.f32.mrf.mxu3  ;;  %2011 = vmatmul.bf16.vlgmr.msra.gmra.mxu0 %v1739_v52  ;;  %2025 = vmatmul.bf16.vlgmr.msra.gmra.mxu1 %v1740_v53 }
 0x70b   : > { %v1715_v59 = vadd.f32 %v1714_v56, %v1509_v46  ;;  %v1729_v60 = vadd.f32 %v1728_v58, %v1510_v47  ;;  %v2799_v47 = vld [vmem:[%s3607_s17] ss:$0 sm:$0xff] }
 0x70d   : > { %v1737_v0 = vmax.f32 %v1715_v59, 0.0  ;;  %v1738_v1 = vmax.f32 %v1729_v60, 0.0 }
 0x70f   : > { %v1741_v2 = vpack.c.bf16 %v1737_v0, %v1733_v62  ;;  %v1742_v3 = vpack.c.bf16 %v1738_v1, %v1734_v63 }
 0x711   : > { %2039 = vmatmul.bf16.vlgmr.msra.gmra.mxu2 %v1741_v2  ;;  %2053 = vmatmul.bf16.vlgmr.msrb.gmra.mxu3 %v1742_v3 }
 0x787   : > { %v2012_v4 = vpop.f32.mrf.mxu0  ;;  %v2026_v7 = vpop.f32.mrf.mxu1 }
 0x788   : > { %v2013_v6 = vadd.f32 %v2797_v5, %v2012_v4 }
 0x78a   : > { %v2027_v8 = vadd.f32 %v2026_v7, %v2013_v6 }
 0x78f   : > { %v2014_v9 = vpop.f32.mrf.mxu0  ;;  %v2028_v18 = vpop.f32.mrf.mxu1 }
 0x790   : > { %v2015_v57 = vadd.f32 %v2797_v5, %v2014_v9 }
 0x792   : > { %v2029_v19 = vadd.f32 %v2028_v18, %v2015_v57 }
 0x794   : > { %v2040_v10 = vpop.f32.mrf.mxu2  ;;  %v2054_v11 = vpop.f32.mrf.mxu3 }
 0x795   : > { %v2041_v12 = vadd.f32 %v2040_v10, %v2027_v8 }
 0x797   : > { %v2055_v61 = vadd.f32 %v2054_v11, %v2041_v12 }
 0x799   : > { %v2059_v15 = vadd.f32 %v2055_v61, %v3480_v13 }
 0x79b   : > { %2063 = vadd.xlane.f32.xlu2 %v2059_v15 }
 0x79c   : > { %v2042_v21 = vpop.f32.mrf.mxu2  ;;  %v2056_v23 = vpop.f32.mrf.mxu3 }
 0x79d   : > { %v2043_v22 = vadd.f32 %v2042_v21, %v2029_v19 }
 0x79f   : > { %v2057_v24 = vadd.f32 %v2056_v23, %v2043_v22 }
 0x7a1   : > { %v2060_v25 = vadd.f32 %v2057_v24, %v3482_v14 }
 0x7a3   : > { %2065 = vadd.xlane.f32.xlu0 %v2060_v25 }
 0x80e   : > { %v2064_v26 = vpop.xlane.xlu2 %2063 }
 0x80f   : > { %v2067_v27 = vmul.f32 %v2064_v26, %v3224_v55 }
 0x811   : > { %v2069_v28 = vsub.f32 %v2059_v15, %v2067_v27 }
 0x813   : > { %v2071_v29 = vmul.f32 %v2069_v28, %v2069_v28 }
 0x815   : > { %2073 = vadd.xlane.f32.xlu1 %v2071_v29 }
 0x816   : > { %v2066_v30 = vpop.xlane.xlu0 %2065 }
 0x817   : > { %v2068_v31 = vmul.f32 %v2066_v30, %v3224_v55 }
 0x819   : > { %v2070_v13 = vsub.f32 %v2060_v25, %v2068_v31 }
 0x81b   : > { %v2072_v32 = vmul.f32 %v2070_v13, %v2070_v13 }
 0x81d   : > { %2075 = vadd.xlane.f32.xlu2 %v2072_v32 }
 0x888   : > { %v2074_v33 = vpop.xlane.xlu1 %2073 }
 0x889   : > { %v2077_v34 = vmul.f32 %v2074_v33, %v3224_v55 }
 0x88b   : > { %v2079_v35 = vadd.f32 1e-05, %v2077_v34 }
 0x88d   : > { %2838 = vrsqrt.f32 %v2079_v35  ;;  %vm2087_vm12 = vweird.f32 %v2079_v35 }
 0x890   : > { %v2076_v14 = vpop.xlane.xlu2 %2075 }
 0x891   : > { %v2078_v36 = vmul.f32 %v2076_v14, %v3224_v55 }
 0x893   : > { %v2839_v37 = vpop.eup %2838  ;;  %v2080_v38 = vadd.f32 1e-05, %v2078_v36 }
 0x894   : > { %v2082_v39 = vmul.f32 %v2839_v37, %v2079_v35  ;;  %vm2088_vm11 = vweird.f32 %v2839_v37 }
 0x895   : > { %2840 = vrsqrt.f32 %v2080_v38  ;;  %vm2089_vm13 = vmor %vm2087_vm12, %vm2088_vm11  ;;  %vm2097_vm15 = vweird.f32 %v2080_v38 }
 0x896   : > { %v2083_v40 = vmul.f32 %v2839_v37, %v2082_v39 }
 0x898   : > { %v2084_v41 = vmul.f32 0.5, %v2083_v40 }
 0x89a   : > { %v2085_v42 = vsub.f32 1.5, %v2084_v41 }
 0x89b   : > { %v2841_v43 = vpop.eup %2840 }
 0x89c   : > { %v2086_v44 = vmul.f32 %v2839_v37, %v2085_v42  ;;  %v2092_v17 = vmul.f32 %v2841_v43, %v2080_v38  ;;  %vm2098_vm14 = vweird.f32 %v2841_v43 }
 0x89d   : > { %vm2099_vm0 = vmor %vm2097_vm15, %vm2098_vm14 }
 0x89e   : > { %v2090_v55 = vsel %vm2089_vm13, %v2839_v37, %v2086_v44  ;;  %v2093_v45 = vmul.f32 %v2841_v43, %v2092_v17 }
 0x89f   : > { %v2101_v46 = vmul.f32 %v2090_v55, %v2069_v28 }
 0x8a0   : > { %v2094_v48 = vmul.f32 0.5, %v2093_v45 }
 0x8a1   : > { %v2106_v49 = vmul.f32 %v2798_v16, %v2101_v46 }
 0x8a2   : > { %v2095_v50 = vsub.f32 1.5, %v2094_v48 }
 0x8a3   : > { %v2111_v51 = vadd.f32 %v2799_v47, %v2106_v49 }
 0x8a4   : > { %v2096_v52 = vmul.f32 %v2841_v43, %v2095_v50 }
 0x8a5   : > { %2113 = vst [vmem:[%s624_s1] sm:$0xff] %v2111_v51 }
 0x8a6   : > { %v2100_v53 = vsel %vm2099_vm0, %v2841_v43, %v2096_v52 }
 0x8a7   : > { %v2102_v54 = vmul.f32 %v2100_v53, %v2070_v13 }
 0x8a9   : > { %v2107_v20 = vmul.f32 %v2798_v16, %v2102_v54 }
 0x8ab   : > { %v2112_v56 = vadd.f32 %v2799_v47, %v2107_v20 }
 0x8ad   : > { %2114 = vst [vmem:[%s624_s1 + $0x8] sm:$0xff] %v2112_v56 }
 0x8ae   : > { %2869 = shalt.err (!%p2866_p3)
}
 0x8af   : > { %s2908_s25 = smov 128   ;;  %s2909_s27 = smov 8  }
 0x8b0   : > { %2751 = dma.vmem_to_hbm [thread:$0]  (%p3043_p5), %s2129_s2, 256, %s2131_s23, %s2116_s0, %s2908_s25, %s2908_s25, %s2909_s27  }
 0x8b1 PF: > { %s3639_s29 = sld [smem:[#allocation7_spill]] }
 0x8b2   : > { %s3640_s30 = sld [smem:[#allocation5_spill]] }
 0x8b7   : > { %p2757_p4 = scmp.ge.s32.totalorder %s3639_s29, 2 }
 0x8b8   : > { %s2145_s6 = sand.u32 1, %s3640_s30  }
 0x8b9   : > { %p2754_p7 = pnand %p2757_p4, %p3047_p6  ;;  %s2146_s7 = scalar_lea.sflag [#allocation3], %s2145_s6 }
 0x8bb   : > { %p2755_p8 = pneg %p2754_p7 }
 0x8bd   : > { %2887 = dma.done.wait (%p2755_p8), %s2146_s7, 256  }
 0x8be   : > { %2889 = vsyncadd (%p2755_p8), %s2146_s7, 4294967040  ;;  %s3642_s30 = sld [smem:[#allocation8_spill]]  ;;  %s3645_s27 = smov %s2896_s28 }
 0x8bf   : > { %s3643_s21 = sld [smem:[#allocation6_spill]] }
 0x8c0   : > { %s3644_s29 = sld [smem:[#allocation9_spill]] }
 0x8c4   : > { %p28_p9 = scmp.ge.s32.totalorder %s3642_s30, 4  }
 0x8c5   : > { %s3646_s28 = smov %s3643_s21 }
 0x8c6   :  { %30 = sbr.rel (!%p28_p9) target bundleno = 9 (0x9), region = 139 }
 0x8cb   :  { %2152 = vsyncpa [#allocation3], 1 }
 0x8cc   :  { %2154 = vsyncpa [#allocation3 + $0x1], 1 }

</bundles_post_ra>
